<compile_context>
chip_gen: v7x
topology: tpu7x:2x2x1
jax: 0.10.0
libtpu: 0.0.40
codegen_flags: <defaults>
</compile_context>

<pallas_src>
import functools

import numpy as np
import jax
import jax.numpy as jnp
from jax import lax
from jax.experimental import pallas as pl
from jax.experimental.pallas import tpu as pltpu


def _round_up(x, m):
    return ((x + m - 1) // m) * m


def _has_multiple_tensorcores():
    """True on chips with >1 TensorCore per chip (v7x). Used only as a
    tiling hint; falls back to False if the device kind is unknown."""
    try:
        kind = jax.devices()[0].device_kind.lower()
    except Exception:
        return False
    return ("v7" in kind) or ("7x" in kind)


def _choose_tile(s_pad, requested, prefer_multi_tile):
    """Largest multiple of 128 <= requested that divides s_pad (s_pad is a
    multiple of 128).  If prefer_multi_tile (2-TC chips), shrink the tile so
    the grid has >= 2 steps rather than collapsing to a single step."""
    t = max(128, min((requested // 128) * 128, s_pad))
    while s_pad % t != 0:
        t -= 128
    if prefer_multi_tile and s_pad // t < 2 and s_pad >= 256:
        t = max(128, (s_pad // 2 // 128) * 128)
        while s_pad % t != 0:
            t -= 128
    return t


def critic_kernel(x_ref, w1_ref, b1_ref, w2s_ref, w2a_ref, b2_ref, w3_ref,
                  b3_ref, o_ref, *, state_size):
    # x_ref: (TILE_S, state_size + action_size) f32 — sequence on sublanes.
    # bf16 cast happens here; the transpose onto the MXU K axis is expressed
    # by contracting on the minor dim of both operands (A @ B^T form).
    xs = x_ref[:, :state_size].astype(jnp.bfloat16)        # (TILE_S, state)
    xa = x_ref[:, state_size:].astype(jnp.bfloat16)        # (TILE_S, A)

    # ---- fc1: (h1, state) x (TILE_S, state)^T -> (h1, TILE_S), f32 acc -----
    z1 = lax.dot_general(w1_ref[...], xs, (((1,), (1,)), ((), ())),
                         preferred_element_type=jnp.float32)
    h1 = jnp.maximum(z1 + b1_ref[...], 0.0)                 # f32 VPU epilogue

    # ---- fc2 = W2s @ h1 + W2a @ action^T + b2 ------------------------------
    z2 = jnp.dot(w2s_ref[...], h1.astype(jnp.bfloat16),
                 preferred_element_type=jnp.float32)         # (h2, TILE_S)
    z2 = z2 + lax.dot_general(w2a_ref[...], xa, (((1,), (1,)), ((), ())),
                              preferred_element_type=jnp.float32)
    h2 = jnp.maximum(z2 + b2_ref[...], 0.0)

    # ---- fc3: 1-wide head as VPU multiply + sublane reduce -----------------
    # Result is naturally lane-major -> lane-dense (1, TILE_S) store.
    o_ref[...] = (jnp.sum(h2 * w3_ref[...], axis=0, keepdims=True)
                  + b3_ref[0, 0])


@functools.partial(jax.jit, static_argnames=("tile_s",))
def critic_forward(state, action, params, *, tile_s=512):
    """state: [B, S, state_size], action: [B, S, action_size] -> [B, S, 1]."""
    assert state.ndim == 3 and action.ndim == 3
    B, S, state_size = state.shape
    action_size = action.shape[2]
    n = B * S

    w1_bf, b1_col, w2s_bf, w2a_bf, b2_col, w3_col, b3_s = params
    h1_dim = w1_bf.shape[0]
    h2_dim = w2s_bf.shape[0]
    feat = state_size + action_size

    # Pad the flattened sequence axis only to a multiple of 128; the tile
    # width is then chosen as a divisor of the padded length.
    s_pad = _round_up(n, 128)
    tile = _choose_tile(s_pad, tile_s, _has_multiple_tensorcores())

    # Single merged input operand (one DMA per grid step).  The transpose and
    # bf16 cast are done inside the kernel, so this is the only wrapper op.
    x = jnp.concatenate([state.reshape(n, state_size),
                         action.reshape(n, action_size)], axis=-1)
    x = jnp.pad(x, ((0, s_pad - n), (0, 0)))                 # (s_pad, feat)

    def resident(shape):
        # Same block every grid step -> stays VMEM-resident across the grid.
        # (pipeline_mode=pl.Buffered(1) would halve their buffering; skipped
        # since the whole weight footprint is < 2 MiB on every generation.)
        nd = len(shape)
        return pl.BlockSpec(shape, lambda i, nd=nd: (0,) * nd)

    out = pl.pallas_call(
        functools.partial(critic_kernel, state_size=state_size),
        out_shape=jax.ShapeDtypeStruct((1, s_pad), jnp.float32),
        grid=(s_pad // tile,),
        in_specs=[
            pl.BlockSpec((tile, feat), lambda i: (i, 0)),    # [state|action]
            resident((h1_dim, state_size)),                  # W1        (bf16)
            resident((h1_dim, 1)),                           # b1 column (f32)
            resident((h2_dim, h1_dim)),                      # W2[:, :h1](bf16)
            resident((h2_dim, action_size)),                 # W2[:, h1:](bf16)
            resident((h2_dim, 1)),                           # b2 column (f32)
            resident((h2_dim, 1)),                           # w3 column (f32)
            pl.BlockSpec(memory_space=pltpu.MemorySpace.SMEM),  # b3 scalar
        ],
        out_specs=pl.BlockSpec((1, tile), lambda i: (0, i)),
        compiler_params=pltpu.CompilerParams(
            dimension_semantics=("parallel",)),  # v7x: S tiles over both TCs
    )(x, w1_bf, b1_col, w2s_bf, w2a_bf, b2_col, w3_col, b3_s)

    return out[:, :n].reshape(B, S, 1)


def prepare_kernel_params(torch_params, h_dim1):
    """Convert PyTorch-layout ([out, in]) params to the kernel layouts."""
    w1, b1, w2, b2, w3, b3 = torch_params
    h_dim2 = w2.shape[0]
    w1_bf = w1.astype(jnp.bfloat16)                 # (h1, state)   MXU lhs
    w2s_bf = w2[:, :h_dim1].astype(jnp.bfloat16)    # (h2, h1)      MXU lhs
    w2a_bf = w2[:, h_dim1:].astype(jnp.bfloat16)    # (h2, A)       MXU lhs
    b1_col = b1.reshape(-1, 1)                      # (h1, 1) f32
    b2_col = b2.reshape(-1, 1)                      # (h2, 1) f32
    w3_col = w3.reshape(h_dim2, 1)                  # (h2, 1) f32
    b3_s = b3.reshape(1, 1)                         # (1, 1)  -> SMEM
    return (w1_bf, b1_col, w2s_bf, w2a_bf, b2_col, w3_col, b3_s)


def init_critic_params(key, state_size, action_size, h_dim1=512, h_dim2=256):
    """Mirror the PyTorch module's reset_parameters() (hidden_init uses
    weight.size()[0]); biases keep nn.Linear's default uniform(+-1/sqrt(fan_in))."""
    ks = jax.random.split(key, 6)

    lim1 = 1.0 / np.sqrt(h_dim1)
    w1 = jax.random.uniform(ks[0], (h_dim1, state_size), jnp.float32, -lim1, lim1)
    b1 = jax.random.uniform(ks[1], (h_dim1,), jnp.float32,
                            -1.0 / np.sqrt(state_size), 1.0 / np.sqrt(state_size))

    lim2 = 1.0 / np.sqrt(h_dim2)
    fan2 = h_dim1 + action_size
    w2 = jax.random.uniform(ks[2], (h_dim2, fan2), jnp.float32, -lim2, lim2)
    b2 = jax.random.uniform(ks[3], (h_dim2,), jnp.float32,
                            -1.0 / np.sqrt(fan2), 1.0 / np.sqrt(fan2))

    w3 = jax.random.uniform(ks[4], (1, h_dim2), jnp.float32, -0.003, 0.003)
    b3 = jax.random.uniform(ks[5], (1,), jnp.float32,
                            -1.0 / np.sqrt(h_dim2), 1.0 / np.sqrt(h_dim2))

    torch_params = (w1, b1, w2, b2, w3, b3)
    kernel_params = prepare_kernel_params(torch_params, h_dim1)
    return torch_params, kernel_params


def critic_reference_f32(state, action, torch_params):
    """Pure f32 reference with the exact PyTorch forward semantics."""
    w1, b1, w2, b2, w3, b3 = torch_params
    h1 = jax.nn.relu(state @ w1.T + b1)
    x = jnp.concatenate([h1, action], axis=-1)
    h2 = jax.nn.relu(x @ w2.T + b2)
    return h2 @ w3.T + b3


def critic_reference_matched(state, action, kernel_params):
    """Reference with the same bf16 rounding / f32 accumulation as the kernel."""
    w1_bf, b1_col, w2s_bf, w2a_bf, b2_col, w3_col, b3_s = kernel_params
    B, S, _ = state.shape
    n = B * S
    xs = state.reshape(n, -1).astype(jnp.bfloat16)
    xa = action.reshape(n, -1).astype(jnp.bfloat16)
    z1 = lax.dot_general(w1_bf, xs, (((1,), (1,)), ((), ())),
                         preferred_element_type=jnp.float32)
    h1 = jax.nn.relu(z1 + b1_col)
    z2 = jnp.dot(w2s_bf, h1.astype(jnp.bfloat16),
                 preferred_element_type=jnp.float32)
    z2 = z2 + lax.dot_general(w2a_bf, xa, (((1,), (1,)), ((), ())),
                              preferred_element_type=jnp.float32)
    h2 = jax.nn.relu(z2 + b2_col)
    out = jnp.sum(h2 * w3_col, axis=0, keepdims=True) + b3_s[0, 0]
    return jnp.transpose(out).reshape(B, S, 1)


if __name__ == "__main__":
    state_size, action_size = 16, 4
    seq = 8
    h_dim1, h_dim2 = 512, 256

    key = jax.random.PRNGKey(0)
    k_params, k_state, k_action = jax.random.split(key, 3)

    torch_params, kernel_params = init_critic_params(
        k_params, state_size, action_size, h_dim1, h_dim2)

    # Inputs as the module's forward sees them after .unsqueeze(0): [1, S, feat]
    state = jax.random.normal(k_state, (1, seq, state_size), jnp.float32)
    action = jax.random.normal(k_action, (1, seq, action_size), jnp.float32)

    out = critic_forward(state, action, kernel_params)
    out = jax.block_until_ready(out)
    assert out.shape == (1, seq, 1)

    # Tight check against a reference with matching bf16/f32 numerics.
    ref_matched = critic_reference_matched(state, action, kernel_params)
    np.testing.assert_allclose(np.asarray(out), np.asarray(ref_matched),
                               rtol=1e-3, atol=1e-4)

    # Loose check against the pure-f32 PyTorch-equivalent math
    # (bf16 matmuls introduce ~1e-4..1e-3 absolute error at these scales).
    ref_f32 = critic_reference_f32(state, action, torch_params)
    np.testing.assert_allclose(np.asarray(out), np.asarray(ref_f32),
                               rtol=5e-2, atol=2e-3)

    print("KERNEL_OK")
</pallas_src>

<mosaic_0001>
module attributes {stable_mosaic.version = 11 : i64} {
  func.func @critic_kernel(%arg0: i32, %arg1: memref<128x20xf32, #tpu.memory_space<vmem>>, %arg2: memref<512x16xbf16, #tpu.memory_space<vmem>>, %arg3: memref<512x1xf32, #tpu.memory_space<vmem>>, %arg4: memref<256x512xbf16, #tpu.memory_space<vmem>>, %arg5: memref<256x4xbf16, #tpu.memory_space<vmem>>, %arg6: memref<256x1xf32, #tpu.memory_space<vmem>>, %arg7: memref<256x1xf32, #tpu.memory_space<vmem>>, %arg8: memref<1x1xf32, #tpu.memory_space<smem>>, %arg9: memref<1x128xf32, #tpu.memory_space<vmem>>) attributes {dimension_semantics = [#tpu.dimension_semantics<parallel>], iteration_bounds = array<i64: 1>, scalar_prefetch = 0 : i64, scratch_operands = 0 : i64, tpu.core_type = #tpu.core_type<tc>, window_params = [{transform_indices = @transform_0, window_bounds = array<i64: 128, 20>}, {pipeline_mode = #tpu.pipeline_mode<synchronous>, transform_indices = @transform_1, window_bounds = array<i64: 512, 16>}, {pipeline_mode = #tpu.pipeline_mode<synchronous>, transform_indices = @transform_2, window_bounds = array<i64: 512, 1>}, {pipeline_mode = #tpu.pipeline_mode<synchronous>, transform_indices = @transform_3, window_bounds = array<i64: 256, 512>}, {pipeline_mode = #tpu.pipeline_mode<synchronous>, transform_indices = @transform_4, window_bounds = array<i64: 256, 4>}, {pipeline_mode = #tpu.pipeline_mode<synchronous>, transform_indices = @transform_5, window_bounds = array<i64: 256, 1>}, {pipeline_mode = #tpu.pipeline_mode<synchronous>, transform_indices = @transform_6, window_bounds = array<i64: 256, 1>}, {transform_indices = @transform_7, window_bounds = array<i64: 1, 1>}, {transform_indices = @transform_8, window_bounds = array<i64: 1, 128>}]} {
    %c0 = arith.constant 0 : index
    %c0_0 = arith.constant 0 : index
    %0 = vector.load %arg1[%c0, %c0_0] : memref<128x20xf32, #tpu.memory_space<vmem>>, vector<128x16xf32>
    %1 = arith.truncf %0 : vector<128x16xf32> to vector<128x16xbf16>
    %c0_1 = arith.constant 0 : index
    %c16 = arith.constant 16 : index
    %2 = vector.load %arg1[%c0_1, %c16] : memref<128x20xf32, #tpu.memory_space<vmem>>, vector<128x4xf32>
    %3 = arith.truncf %2 : vector<128x4xf32> to vector<128x4xbf16>
    %c0_2 = arith.constant 0 : index
    %c0_3 = arith.constant 0 : index
    %4 = vector.load %arg2[%c0_2, %c0_3] : memref<512x16xbf16, #tpu.memory_space<vmem>>, vector<512x16xbf16>
    %cst = arith.constant dense<0.000000e+00> : vector<512x128xf32>
    %5 = tpu.matmul %4, %1, %cst {dimension_numbers = #tpu.dot_dimension_numbers<[1], [1], [0], [0], [0, 0, 1, 0], [], []>} : vector<512x16xbf16>, vector<128x16xbf16>, vector<512x128xf32> -> vector<512x128xf32>
    %c0_4 = arith.constant 0 : index
    %c0_5 = arith.constant 0 : index
    %6 = vector.load %arg3[%c0_4, %c0_5] : memref<512x1xf32, #tpu.memory_space<vmem>>, vector<512x1xf32>
    %7 = vector.broadcast %6 : vector<512x1xf32> to vector<512x128xf32>
    %8 = arith.addf %5, %7 : vector<512x128xf32>
    %cst_6 = arith.constant 0.000000e+00 : f32
    %9 = vector.broadcast %cst_6 : f32 to vector<512x128xf32>
    %10 = arith.maximumf %8, %9 : vector<512x128xf32>
    %c0_7 = arith.constant 0 : index
    %c0_8 = arith.constant 0 : index
    %11 = vector.load %arg4[%c0_7, %c0_8] : memref<256x512xbf16, #tpu.memory_space<vmem>>, vector<256x512xbf16>
    %12 = arith.truncf %10 : vector<512x128xf32> to vector<512x128xbf16>
    %cst_9 = arith.constant dense<0.000000e+00> : vector<256x128xf32>
    %13 = tpu.matmul %11, %12, %cst_9 {dimension_numbers = #tpu.dot_dimension_numbers<[1], [0], [0], [1], [0, 0, 1, 1], [], []>} : vector<256x512xbf16>, vector<512x128xbf16>, vector<256x128xf32> -> vector<256x128xf32>
    %c0_10 = arith.constant 0 : index
    %c0_11 = arith.constant 0 : index
    %14 = vector.load %arg5[%c0_10, %c0_11] : memref<256x4xbf16, #tpu.memory_space<vmem>>, vector<256x4xbf16>
    %cst_12 = arith.constant dense<0.000000e+00> : vector<256x128xf32>
    %15 = tpu.matmul %14, %3, %cst_12 {dimension_numbers = #tpu.dot_dimension_numbers<[1], [1], [0], [0], [0, 0, 1, 0], [], []>} : vector<256x4xbf16>, vector<128x4xbf16>, vector<256x128xf32> -> vector<256x128xf32>
    %16 = arith.addf %13, %15 : vector<256x128xf32>
    %c0_13 = arith.constant 0 : index
    %c0_14 = arith.constant 0 : index
    %17 = vector.load %arg6[%c0_13, %c0_14] : memref<256x1xf32, #tpu.memory_space<vmem>>, vector<256x1xf32>
    %18 = vector.broadcast %17 : vector<256x1xf32> to vector<256x128xf32>
    %19 = arith.addf %16, %18 : vector<256x128xf32>
    %cst_15 = arith.constant 0.000000e+00 : f32
    %20 = vector.broadcast %cst_15 : f32 to vector<256x128xf32>
    %21 = arith.maximumf %19, %20 : vector<256x128xf32>
    %c0_16 = arith.constant 0 : index
    %c0_17 = arith.constant 0 : index
    %22 = vector.load %arg7[%c0_16, %c0_17] : memref<256x1xf32, #tpu.memory_space<vmem>>, vector<256x1xf32>
    %23 = vector.broadcast %22 : vector<256x1xf32> to vector<256x128xf32>
    %24 = arith.mulf %21, %23 : vector<256x128xf32>
    %cst_18 = arith.constant dense<0.000000e+00> : vector<128xf32>
    %25 = vector.multi_reduction <add>, %24, %cst_18 [0] : vector<256x128xf32> to vector<128xf32>
    %26 = vector.shape_cast %25 : vector<128xf32> to vector<1x128xf32>
    %c0_19 = arith.constant 0 : index
    %c0_20 = arith.constant 0 : index
    %27 = memref.load %arg8[%c0_19, %c0_20] : memref<1x1xf32, #tpu.memory_space<smem>>
    %28 = vector.broadcast %27 : f32 to vector<1x128xf32>
    %29 = arith.addf %26, %28 : vector<1x128xf32>
    %c0_21 = arith.constant 0 : index
    %c0_22 = arith.constant 0 : index
    %30 = vector.load %arg9[%c0_21, %c0_22] : memref<1x128xf32, #tpu.memory_space<vmem>>, vector<1x128xf32>
    tpu.vector_store %arg9[%c0_21, %c0_22], %29 {strides = array<i32>} : memref<1x128xf32, #tpu.memory_space<vmem>>, vector<1x128xf32>,
    return
  }
  func.func @transform_0(%arg0: i32) -> (i32, i32) {
    %c0_i32 = arith.constant 0 : i32
    %c0_i32_0 = arith.constant 0 : i32
    return %arg0, %c0_i32 : i32, i32
  }
  func.func @transform_1(%arg0: i32) -> (i32, i32) {
    %c0_i32 = arith.constant 0 : i32
    %c0_i32_0 = arith.constant 0 : i32
    %c0_i32_1 = arith.constant 0 : i32
    return %c0_i32, %c0_i32_0 : i32, i32
  }
  func.func @transform_2(%arg0: i32) -> (i32, i32) {
    %c0_i32 = arith.constant 0 : i32
    %c0_i32_0 = arith.constant 0 : i32
    %c0_i32_1 = arith.constant 0 : i32
    return %c0_i32, %c0_i32_0 : i32, i32
  }
  func.func @transform_3(%arg0: i32) -> (i32, i32) {
    %c0_i32 = arith.constant 0 : i32
    %c0_i32_0 = arith.constant 0 : i32
    %c0_i32_1 = arith.constant 0 : i32
    return %c0_i32, %c0_i32_0 : i32, i32
  }
  func.func @transform_4(%arg0: i32) -> (i32, i32) {
    %c0_i32 = arith.constant 0 : i32
    %c0_i32_0 = arith.constant 0 : i32
    %c0_i32_1 = arith.constant 0 : i32
    return %c0_i32, %c0_i32_0 : i32, i32
  }
  func.func @transform_5(%arg0: i32) -> (i32, i32) {
    %c0_i32 = arith.constant 0 : i32
    %c0_i32_0 = arith.constant 0 : i32
    %c0_i32_1 = arith.constant 0 : i32
    return %c0_i32, %c0_i32_0 : i32, i32
  }
  func.func @transform_6(%arg0: i32) -> (i32, i32) {
    %c0_i32 = arith.constant 0 : i32
    %c0_i32_0 = arith.constant 0 : i32
    %c0_i32_1 = arith.constant 0 : i32
    return %c0_i32, %c0_i32_0 : i32, i32
  }
  func.func @transform_7(%arg0: i32) -> (i32, i32) {
    %c0_i32 = arith.constant 0 : i32
    %c0_i32_0 = arith.constant 0 : i32
    %c0_i32_1 = arith.constant 0 : i32
    return %c0_i32, %c0_i32_0 : i32, i32
  }
  func.func @transform_8(%arg0: i32) -> (i32, i32) {
    %c0_i32 = arith.constant 0 : i32
    %c0_i32_0 = arith.constant 0 : i32
    return %c0_i32, %arg0 : i32, i32
  }
}

</mosaic_0001>

<bundles_post_ra>
// kernel: critic_forward.1
= control target key start
LH: loop header
LB: loop body
LE: loop exit
PB: predicated region body
PF: predicated region fallthrough
CT: control target
= control target key end

     0   :  { %v3526_v3 = vmov 0   ;;  %vm663_vm0 = vcmask 130048   ;;  %s3527_s21 = smov 112   ;;  %vm1369_vm1 = vcmask 31744   ;;  %s5018_s0 = inlined_call_operand.vmem [shape: f32[128,20], index: 0, kind: input, shape index: {}]   ;;  %s5019_s1 = inlined_call_operand.vmem [shape: bf16[512,16], index: 1, kind: input, shape index: {}]   ;;  %s5020_s2 = inlined_call_operand.vmem [shape: f32[512,1], index: 2, kind: input, shape index: {}]   ;;  %s5021_s5 = inlined_call_operand.vmem [shape: f32[256,1], index: 5, kind: input, shape index: {}]   ;;  %s5022_s4 = inlined_call_operand.vmem [shape: bf16[256,4], index: 4, kind: input, shape index: {}]   ;;  %s5023_s6 = inlined_call_operand.vmem [shape: f32[256,1], index: 6, kind: input, shape index: {}]   ;;  %s5024_s3 = inlined_call_operand.vmem [shape: bf16[256,512], index: 3, kind: input, shape index: {}]   ;;  %s5025_s7 = inlined_call_operand.<no memory space> [shape: f32[1,1], index: 7, kind: input, shape index: {}]   ;;  %s5026_s8 = inlined_call_operand.vmem [shape: f32[1,128], index: 8, kind: output, shape index: {}]  }
   0x1   :  { %v35_v0 = vld [vmem:[%s5018_s0 + $0x20] sm:$0xff]  ;;  %v36_v1 = vld [vmem:[%s5018_s0 + $0x28] sm:$0xff]  ;;  %3381 = vset.pattern.permute.xlu1 %v3526_v3  ;;  %3380 = vset.pattern.permute.xlu0 %v3526_v3  ;;  %v37_v6 = vld [vmem:[%s5018_s0 + $0x30] sm:$0xff] }
   0x2   :  { %v31_v2 = vld [vmem:[%s5018_s0] sm:$0xff]  ;;  %v49_v4 = vpack.c.bf16 %v36_v1, %v35_v0  ;;  %v32_v5 = vld [vmem:[%s5018_s0 + $0x8] sm:$0xff]  ;;  %v38_v7 = vld [vmem:[%s5018_s0 + $0x38] sm:$0xff] }
   0x3   :  { %v47_v8 = vpack.c.bf16 %v32_v5, %v31_v2  ;;  %v33_v9 = vld [vmem:[%s5018_s0 + $0x10] sm:$0xff]  ;;  %v34_v10 = vld [vmem:[%s5018_s0 + $0x18] sm:$0xff]  ;;  %v50_v11 = vpack.c.bf16 %v38_v7, %v37_v6  ;;  %v39_v16 = vld [vmem:[%s5018_s0 + $0x40] sm:$0xff] }
   0x4   :  { %1357 = vrot.lane.b32.xlu1 %v49_v4, %s3527_s21  ;;  %v48_v13 = vpack.c.bf16 %v34_v10, %v33_v9  ;;  %v41_v14 = vld [vmem:[%s5018_s0 + $0x50] sm:$0xff]  ;;  %v42_v15 = vld [vmem:[%s5018_s0 + $0x58] sm:$0xff]  ;;  %v40_v17 = vld [vmem:[%s5018_s0 + $0x48] sm:$0xff]  ;;  %v767_v30 = vsel %vm663_vm0, %v49_v4, 0 }
   0x5   :  { %1353 = vrot.lane.b32.xlu0 %v47_v8, %s3527_s21  ;;  %3362 = vmatprep.subr.msk.bf16.mxu0 %vm663_vm0, %v47_v8  ;;  %v761_v12 = vsel %vm663_vm0, %v47_v8, 0  ;;  %v52_v18 = vpack.c.bf16 %v42_v15, %v41_v14  ;;  %v51_v19 = vpack.c.bf16 %v40_v17, %v39_v16  ;;  %v45_v20 = vld [vmem:[%s5018_s0 + $0x70] sm:$0xff]  ;;  %v46_v21 = vld [vmem:[%s5018_s0 + $0x78] sm:$0xff]  ;;  %v43_v22 = vld [vmem:[%s5018_s0 + $0x60] sm:$0xff]  ;;  %v770_v35 = vsel %vm663_vm0, %v50_v11, 0 }
   0x6   :  { %3219 = vmatpush3.bf16.xpose.msra.mxu0 %v761_v12  ;;  %v44_v23 = vld [vmem:[%s5018_s0 + $0x68] sm:$0xff]  ;;  %v764_v24 = vsel %vm663_vm0, %v48_v13, 0  ;;  %v3630_v25 = vpack.c.bf16 %v46_v21, %v45_v20  ;;  %v3382_v27 = vld [vmem:[%s5019_s1] sm:$0xff]   ;;  %v121_v31 = vld [vmem:[%s5020_s2 + $0x10] sm:$0xff] }
   0x7   :  { %3363 = vmatprep.subr.msk.bf16.mxu0 %vm663_vm0, %v48_v13  ;;  %v53_v26 = vpack.c.bf16 %v44_v23, %v43_v22  ;;  %v120_v28 = vld [vmem:[%s5020_s2 + $0x8] sm:$0xff]  ;;  %3234 = vmatprep.mubr.msk.bf16.mxu0 %vm663_vm0, %v3382_v27  ;;  %v119_v29 = vld [vmem:[%s5020_s2] sm:$0xff]  ;;  %v122_v32 = vld [vmem:[%s5020_s2 + $0x18] sm:$0xff]  ;;  %v773_v40 = vsel %vm663_vm0, %v51_v19, 0  ;;  %v776_v45 = vsel %vm663_vm0, %v52_v18, 0 }
   0x8   :  { %1359 = vrot.lane.b32.xlu1 %v50_v11, %s3527_s21  ;;  %v135_v33 = vld [vmem:[%s5020_s2 + $0x80] sm:$0xff]  ;;  %v136_v34 = vld [vmem:[%s5020_s2 + $0x88] sm:$0xff]  ;;  %v137_v36 = vld [vmem:[%s5020_s2 + $0x90] sm:$0xff]  ;;  %v782_v55 = vsel %vm663_vm0, %v3630_v25, 0 }
   0x9   :  { %1355 = vrot.lane.b32.xlu0 %v48_v13, %s3527_s21  ;;  %v138_v37 = vld [vmem:[%s5020_s2 + $0x98] sm:$0xff]  ;;  %v139_v38 = vld [vmem:[%s5020_s2 + $0xa0] sm:$0xff]  ;;  %v140_v39 = vld [vmem:[%s5020_s2 + $0xa8] sm:$0xff]  ;;  %v779_v50 = vsel %vm663_vm0, %v53_v26, 0 }
   0xa   :  { %v123_v41 = vld [vmem:[%s5020_s2 + $0x20] sm:$0xff]  ;;  %v124_v42 = vld [vmem:[%s5020_s2 + $0x28] sm:$0xff]  ;;  %v141_v43 = vld [vmem:[%s5020_s2 + $0xb0] sm:$0xff] }
   0xb   :  { %v142_v44 = vld [vmem:[%s5020_s2 + $0xb8] sm:$0xff]  ;;  %v125_v46 = vld [vmem:[%s5020_s2 + $0x30] sm:$0xff]  ;;  %v143_v48 = vld [vmem:[%s5020_s2 + $0xc0] sm:$0xff] }
   0xc   :  { %1363 = vrot.lane.b32.xlu1 %v52_v18, %s3527_s21  ;;  %v126_v47 = vld [vmem:[%s5020_s2 + $0x38] sm:$0xff]  ;;  %v144_v49 = vld [vmem:[%s5020_s2 + $0xc8] sm:$0xff]  ;;  %v127_v51 = vld [vmem:[%s5020_s2 + $0x40] sm:$0xff] }
   0xd   :  { %1361 = vrot.lane.b32.xlu0 %v51_v19, %s3527_s21  ;;  %v128_v52 = vld [vmem:[%s5020_s2 + $0x48] sm:$0xff]  ;;  %v145_v53 = vld [vmem:[%s5020_s2 + $0xd0] sm:$0xff]  ;;  %v146_v54 = vld [vmem:[%s5020_s2 + $0xd8] sm:$0xff] }
   0xe   :  { %3221 = vmatpush3.bf16.xpose.msra.mxu0 %v764_v24  ;;  %v129_v56 = vld [vmem:[%s5020_s2 + $0x50] sm:$0xff]  ;;  %v130_v57 = vld [vmem:[%s5020_s2 + $0x58] sm:$0xff]  ;;  %v147_v58 = vld [vmem:[%s5020_s2 + $0xe0] sm:$0xff] }
   0xf   :  { %3364 = vmatprep.subr.msk.bf16.mxu0 %vm663_vm0, %v49_v4  ;;  %v148_v59 = vld [vmem:[%s5020_s2 + $0xe8] sm:$0xff]  ;;  %v3384_v61 = vld [vmem:[%s5019_s1 + $0x10] sm:$0xff]   ;;  %v131_v62 = vld [vmem:[%s5020_s2 + $0x60] sm:$0xff] }
  0x10   :  { %1367 = vrot.lane.b32.xlu1 %v3630_v25, %s3527_s21  ;;  %v3383_v60 = vld [vmem:[%s5019_s1 + $0x8] sm:$0xff]   ;;  %v149_v0 = vld [vmem:[%s5020_s2 + $0xf0] sm:$0xff]  ;;  %v3385_v1 = vld [vmem:[%s5019_s1 + $0x18] sm:$0xff]  }
  0x11   :  { %1365 = vrot.lane.b32.xlu0 %v53_v26, %s3527_s21  ;;  %v132_v63 = vld [vmem:[%s5020_s2 + $0x68] sm:$0xff]  ;;  %v150_v2 = vld [vmem:[%s5020_s2 + $0xf8] sm:$0xff]  ;;  %v3386_v3 = vld [vmem:[%s5019_s1 + $0x20] sm:$0xff]  }
  0x12   :  { %v133_v4 = vld [vmem:[%s5020_s2 + $0x70] sm:$0xff]  ;;  %v134_v5 = vld [vmem:[%s5020_s2 + $0x78] sm:$0xff]  ;;  %v167_v6 = vld [vmem:[%s5020_s2 + $0x180] sm:$0xff] }
  0x13   :  { %v3387_v7 = vld [vmem:[%s5019_s1 + $0x28] sm:$0xff]   ;;  %v3388_v9 = vld [vmem:[%s5019_s1 + $0x30] sm:$0xff]   ;;  %v151_v10 = vld [vmem:[%s5020_s2 + $0x100] sm:$0xff] }
  0x14   :  { %190 = vperm.xlu1 %3381, %v120_v28   ;;  %v168_v8 = vld [vmem:[%s5020_s2 + $0x188] sm:$0xff]  ;;  %v169_v12 = vld [vmem:[%s5020_s2 + $0x190] sm:$0xff]  ;;  %v3389_v13 = vld [vmem:[%s5019_s1 + $0x38] sm:$0xff]  }
  0x15   :  { %185 = vperm.xlu0 %3380, %v119_v29   ;;  %v170_v14 = vld [vmem:[%s5020_s2 + $0x198] sm:$0xff]  ;;  %v3390_v15 = vld [vmem:[%s5019_s1 + $0x40] sm:$0xff]   ;;  %v153_v16 = vld [vmem:[%s5020_s2 + $0x110] sm:$0xff] }
  0x16   :  { %3223 = vmatpush3.bf16.xpose.msra.mxu0 %v767_v30  ;;  %v154_v17 = vld [vmem:[%s5020_s2 + $0x118] sm:$0xff]  ;;  %v172_v20 = vld [vmem:[%s5020_s2 + $0x1a8] sm:$0xff]  ;;  %v3392_v21 = vld [vmem:[%s5019_s1 + $0x50] sm:$0xff]  }
  0x17   :  { %3365 = vmatprep.subr.msk.bf16.mxu0 %vm663_vm0, %v50_v11  ;;  %v152_v11 = vld [vmem:[%s5020_s2 + $0x108] sm:$0xff]  ;;  %v155_v22 = vld [vmem:[%s5020_s2 + $0x120] sm:$0xff]  ;;  %v173_v24 = vld [vmem:[%s5020_s2 + $0x1b0] sm:$0xff] }
  0x18   :  { %195 = vperm.xlu1 %3381, %v121_v31   ;;  %v156_v23 = vld [vmem:[%s5020_s2 + $0x128] sm:$0xff]  ;;  %v3394_v27 = vld [vmem:[%s5019_s1 + $0x60] sm:$0xff]   ;;  %v157_v28 = vld [vmem:[%s5020_s2 + $0x130] sm:$0xff] }
  0x19   :  { %200 = vperm.xlu0 %3380, %v122_v32   ;;  %v158_v29 = vld [vmem:[%s5020_s2 + $0x138] sm:$0xff]  ;;  %v175_v30 = vld [vmem:[%s5020_s2 + $0x1c0] sm:$0xff]  ;;  %v3395_v31 = vld [vmem:[%s5019_s1 + $0x68] sm:$0xff]  }
  0x1a   :  { %v176_v32 = vld [vmem:[%s5020_s2 + $0x1c8] sm:$0xff] }
  0x1c   :  { %265 = vperm.xlu1 %3381, %v135_v33   ;;  %v3396_v33 = vld [vmem:[%s5019_s1 + $0x70] sm:$0xff]  }
  0x1d   :  { %270 = vperm.xlu0 %3380, %v136_v34   ;;  %v159_v34 = vld [vmem:[%s5020_s2 + $0x140] sm:$0xff] }
  0x1e   :  { %3225 = vmatpush3.bf16.xpose.msra.mxu0 %v770_v35  ;;  %v160_v35 = vld [vmem:[%s5020_s2 + $0x148] sm:$0xff] }
  0x1f   :  { %3366 = vmatprep.subr.msk.bf16.mxu0 %vm663_vm0, %v51_v19  ;;  %v3391_v19 = vld [vmem:[%s5019_s1 + $0x48] sm:$0xff]  }
  0x20   :  { %275 = vperm.xlu1 %3381, %v137_v36  }
  0x21   :  { %280 = vperm.xlu0 %3380, %v138_v37  }
  0x24   :  { %285 = vperm.xlu1 %3381, %v139_v38   ;;  %v177_v38 = vld [vmem:[%s5020_s2 + $0x1d0] sm:$0xff] }
  0x25   :  { %290 = vperm.xlu0 %3380, %v140_v39   ;;  %v3397_v39 = vld [vmem:[%s5019_s1 + $0x78] sm:$0xff]  }
  0x26   :  { %3227 = vmatpush3.bf16.xpose.msra.mxu0 %v773_v40  ;;  %v178_v40 = vld [vmem:[%s5020_s2 + $0x1d8] sm:$0xff] }
  0x27   :  { %3367 = vmatprep.subr.msk.bf16.mxu0 %vm663_vm0, %v52_v18  ;;  %v171_v18 = vld [vmem:[%s5020_s2 + $0x1a0] sm:$0xff] }
  0x28   :  { %205 = vperm.xlu1 %3381, %v123_v41   ;;  %v3398_v41 = vld [vmem:[%s5019_s1 + $0x80] sm:$0xff]  }
  0x29   :  { %210 = vperm.xlu0 %3380, %v124_v42  }
  0x2c   :  { %295 = vperm.xlu1 %3381, %v141_v43   ;;  %v161_v43 = vld [vmem:[%s5020_s2 + $0x150] sm:$0xff] }
  0x2d   :  { %300 = vperm.xlu0 %3380, %v142_v44   ;;  %v162_v44 = vld [vmem:[%s5020_s2 + $0x158] sm:$0xff] }
  0x2e   :  { %3229 = vmatpush3.bf16.xpose.msra.mxu0 %v776_v45 }
  0x2f   :  { %3368 = vmatprep.subr.msk.bf16.mxu0 %vm663_vm0, %v53_v26  ;;  %v174_v26 = vld [vmem:[%s5020_s2 + $0x1b8] sm:$0xff] }
  0x30   :  { %215 = vperm.xlu1 %3381, %v125_v46  }
  0x31   :  { %220 = vperm.xlu0 %3380, %v126_v47   ;;  %v179_v47 = vld [vmem:[%s5020_s2 + $0x1e0] sm:$0xff] }
  0x34   :  { %305 = vperm.xlu1 %3381, %v143_v48   ;;  %v3399_v48 = vld [vmem:[%s5019_s1 + $0x88] sm:$0xff]  }
  0x35   :  { %310 = vperm.xlu0 %3380, %v144_v49   ;;  %v180_v49 = vld [vmem:[%s5020_s2 + $0x1e8] sm:$0xff] }
  0x36   :  { %3231 = vmatpush3.bf16.xpose.msra.mxu0 %v779_v50  ;;  %v3400_v50 = vld [vmem:[%s5019_s1 + $0x90] sm:$0xff]  }
  0x37   :  { %3369 = vmatprep.subr.msk.bf16.mxu0 %vm663_vm0, %v3630_v25  ;;  %v3393_v25 = vld [vmem:[%s5019_s1 + $0x58] sm:$0xff]  }
  0x38   :  { %225 = vperm.xlu1 %3381, %v127_v51   ;;  %v163_v51 = vld [vmem:[%s5020_s2 + $0x160] sm:$0xff] }
  0x39   :  { %230 = vperm.xlu0 %3380, %v128_v52   ;;  %v164_v52 = vld [vmem:[%s5020_s2 + $0x168] sm:$0xff] }
  0x3c   :  { %315 = vperm.xlu1 %3381, %v145_v53  }
  0x3d   :  { %320 = vperm.xlu0 %3380, %v146_v54  }
  0x3e   :  { %3233 = vmatpush3.bf16.xpose.msra.mxu0 %v782_v55  ;;  %v181_v55 = vld [vmem:[%s5020_s2 + $0x1f0] sm:$0xff] }
  0x40   :  { %235 = vperm.xlu1 %3381, %v129_v56   ;;  %v3401_v56 = vld [vmem:[%s5019_s1 + $0x98] sm:$0xff]  }
  0x41   :  { %240 = vperm.xlu0 %3380, %v130_v57   ;;  %v182_v57 = vld [vmem:[%s5020_s2 + $0x1f8] sm:$0xff] }
  0x44   :  { %325 = vperm.xlu1 %3381, %v147_v58   ;;  %v3402_v58 = vld [vmem:[%s5019_s1 + $0xa0] sm:$0xff]  }
  0x45   :  { %330 = vperm.xlu0 %3380, %v148_v59   ;;  %3235 = vmatmul.mubr.msk.bf16.vlgmr.msra.gmra.mrb[0].mxu0 %vm663_vm0, %v3383_v60  ;;  %v165_v59 = vld [vmem:[%s5020_s2 + $0x170] sm:$0xff]  ;;  %v166_v60 = vld [vmem:[%s5020_s2 + $0x178] sm:$0xff] }
  0x46   :  { %3238 = vmatprep.mubr.msk.bf16.mxu0 %vm663_vm0, %v3384_v61 }
  0x48   :  { %245 = vperm.xlu1 %3381, %v131_v62  }
  0x49   :  { %250 = vperm.xlu0 %3380, %v132_v63   ;;  %v2245_v63 = vld [vmem:[%s5021_s5] sm:$0xff] }
  0x4c   :  { %335 = vperm.xlu1 %3381, %v149_v0   ;;  %v3403_v0 = vld [vmem:[%s5019_s1 + $0xa8] sm:$0xff]  }
  0x4d   :  { %340 = vperm.xlu0 %3380, %v150_v2   ;;  %3239 = vmatmul.mubr.msk.bf16.gmra.mrb[4].mxu0 %vm663_vm0, %v3385_v1  ;;  %v2246_v1 = vld [vmem:[%s5021_s5 + $0x8] sm:$0xff]  ;;  %v3404_v2 = vld [vmem:[%s5019_s1 + $0xb0] sm:$0xff]  }
  0x4e   :  { %3242 = vmatprep.mubr.msk.bf16.mxu0 %vm663_vm0, %v3386_v3  ;;  %v2247_v3 = vld [vmem:[%s5021_s5 + $0x10] sm:$0xff] }
  0x50   :  { %255 = vperm.xlu1 %3381, %v133_v4   ;;  %v2248_v4 = vld [vmem:[%s5021_s5 + $0x18] sm:$0xff] }
  0x51   :  { %260 = vperm.xlu0 %3380, %v134_v5  }
  0x54   :  { %425 = vperm.xlu1 %3381, %v167_v6  }
  0x55   :  { %430 = vperm.xlu0 %3380, %v168_v8   ;;  %3243 = vmatmul.mubr.msk.bf16.gmra.mrb[8].mxu0 %vm663_vm0, %v3387_v7  ;;  %v2249_v7 = vld [vmem:[%s5021_s5 + $0x20] sm:$0xff]  ;;  %v3405_v8 = vld [vmem:[%s5019_s1 + $0xb8] sm:$0xff]  }
  0x56   :  { %3246 = vmatprep.mubr.msk.bf16.mxu0 %vm663_vm0, %v3388_v9  ;;  %v2250_v9 = vld [vmem:[%s5021_s5 + $0x28] sm:$0xff] }
  0x58   :  { %345 = vperm.xlu1 %3381, %v151_v10   ;;  %v3406_v10 = vld [vmem:[%s5019_s1 + $0xc0] sm:$0xff]  }
  0x59   :  { %350 = vperm.xlu0 %3380, %v152_v11   ;;  %v2251_v11 = vld [vmem:[%s5021_s5 + $0x30] sm:$0xff] }
  0x5c   :  { %435 = vperm.xlu1 %3381, %v169_v12   ;;  %v2252_v12 = vld [vmem:[%s5021_s5 + $0x38] sm:$0xff] }
  0x5d   :  { %440 = vperm.xlu0 %3380, %v170_v14   ;;  %3247 = vmatmul.mubr.msk.bf16.gmra.mrb[12].mxu0 %vm663_vm0, %v3389_v13 }
  0x5e   :  { %3250 = vmatprep.mubr.msk.bf16.mxu0 %vm663_vm0, %v3390_v15  ;;  %v2253_v15 = vld [vmem:[%s5021_s5 + $0x40] sm:$0xff] }
  0x60   :  { %355 = vperm.xlu1 %3381, %v153_v16   ;;  %v3407_v16 = vld [vmem:[%s5019_s1 + $0xc8] sm:$0xff]  }
  0x61   :  { %360 = vperm.xlu0 %3380, %v154_v17   ;;  %v3414_v17 = vld [vmem:[%s5022_s4] sm:$0xff]  }
  0x62   :  { %3314 = vmatprep.mubr.msk.bf16.mxu1 %vm1369_vm1, %v3414_v17  ;;  %v2511_v17 = vld [vmem:[%s5023_s6 + $0x50] sm:$0xff] }
  0x64   :  { %445 = vperm.xlu1 %3381, %v171_v18   ;;  %v2254_v18 = vld [vmem:[%s5021_s5 + $0x48] sm:$0xff] }
  0x65   :  { %450 = vperm.xlu0 %3380, %v172_v20   ;;  %3251 = vmatmul.mubr.msk.bf16.gmra.mrb[16].mxu0 %vm663_vm0, %v3391_v19  ;;  %v3408_v19 = vld [vmem:[%s5019_s1 + $0xd0] sm:$0xff]  }
  0x66   :  { %3254 = vmatprep.mubr.msk.bf16.mxu0 %vm663_vm0, %v3392_v21  ;;  %v2255_v21 = vld [vmem:[%s5021_s5 + $0x50] sm:$0xff] }
  0x68   :  { %365 = vperm.xlu1 %3381, %v155_v22   ;;  %v2256_v22 = vld [vmem:[%s5021_s5 + $0x58] sm:$0xff] }
  0x69   :  { %370 = vperm.xlu0 %3380, %v156_v23   ;;  %v2257_v23 = vld [vmem:[%s5021_s5 + $0x60] sm:$0xff] }
  0x6c   :  { %455 = vperm.xlu1 %3381, %v173_v24   ;;  %v3409_v24 = vld [vmem:[%s5019_s1 + $0xd8] sm:$0xff]  }
  0x6d   :  { %460 = vperm.xlu0 %3380, %v174_v26   ;;  %3255 = vmatmul.mubr.msk.bf16.gmra.mrb[20].mxu0 %vm663_vm0, %v3393_v25  ;;  %v2258_v25 = vld [vmem:[%s5021_s5 + $0x68] sm:$0xff]  ;;  %v3410_v26 = vld [vmem:[%s5019_s1 + $0xe0] sm:$0xff]  }
  0x6e   :  { %3258 = vmatprep.mubr.msk.bf16.mxu0 %vm663_vm0, %v3394_v27 }
  0x70   :  { %375 = vperm.xlu1 %3381, %v157_v28   ;;  %v2259_v28 = vld [vmem:[%s5021_s5 + $0x70] sm:$0xff] }
  0x71   :  { %380 = vperm.xlu0 %3380, %v158_v29   ;;  %v2260_v29 = vld [vmem:[%s5021_s5 + $0x78] sm:$0xff] }
  0x74   :  { %465 = vperm.xlu1 %3381, %v175_v30  }
  0x75   :  { %470 = vperm.xlu0 %3380, %v176_v32   ;;  %3259 = vmatmul.mubr.msk.bf16.gmra.mrb[24].mxu0 %vm663_vm0, %v3395_v31  ;;  %v2261_v31 = vld [vmem:[%s5021_s5 + $0x80] sm:$0xff]  ;;  %v3411_v32 = vld [vmem:[%s5019_s1 + $0xe8] sm:$0xff]  }
  0x76   :  { %3262 = vmatprep.mubr.msk.bf16.mxu0 %vm663_vm0, %v3396_v33  ;;  %v1358_v46 = vpop.permute.xlu1 %1357  ;;  %v2262_v33 = vld [vmem:[%s5021_s5 + $0x88] sm:$0xff] }
  0x77   :  { %v1354_v36 = vpop.permute.xlu0 %1353  ;;  %v1425_v53 = vsel %vm1369_vm1, %v1358_v46, 0 }
  0x78   :  { %385 = vperm.xlu1 %3381, %v159_v34   ;;  %3370 = vmatprep.subr.msk.bf16.mxu1 %vm1369_vm1, %v1354_v36  ;;  %v1419_v37 = vsel %vm1369_vm1, %v1354_v36, 0  ;;  %v3412_v34 = vld [vmem:[%s5019_s1 + $0xf0] sm:$0xff]  }
  0x79   :  { %390 = vperm.xlu0 %3380, %v160_v35   ;;  %3299 = vmatpush3.bf16.xpose.msra.mxu1 %v1419_v37  ;;  %v3415_v35 = vld [vmem:[%s5022_s4 + $0x8] sm:$0xff]   ;;  %v2263_v36 = vld [vmem:[%s5021_s5 + $0x90] sm:$0xff] }
  0x7a   :  { %v1360_v54 = vpop.permute.xlu1 %1359  ;;  %v3416_v37 = vld [vmem:[%s5022_s4 + $0x10] sm:$0xff]  }
  0x7b   :  { %v1356_v42 = vpop.permute.xlu0 %1355  ;;  %v1428_v61 = vsel %vm1369_vm1, %v1360_v54, 0 }
  0x7c   :  { %475 = vperm.xlu1 %3381, %v177_v38   ;;  %3371 = vmatprep.subr.msk.bf16.mxu1 %vm1369_vm1, %v1356_v42  ;;  %v1422_v45 = vsel %vm1369_vm1, %v1356_v42, 0  ;;  %v3413_v42 = vld [vmem:[%s5019_s1 + $0xf8] sm:$0xff]  }
  0x7d   :  { %480 = vperm.xlu0 %3380, %v178_v40   ;;  %3263 = vmatmul.mubr.msk.bf16.gmra.mrb[28].mxu0 %vm663_vm0, %v3397_v39  ;;  %v2264_v39 = vld [vmem:[%s5021_s5 + $0x98] sm:$0xff] }
  0x7e   :  { %3266 = vmatprep.mubr.msk.bf16.mxu0 %vm663_vm0, %v3398_v41  ;;  %v1364_v6 = vpop.permute.xlu1 %1363  ;;  %v2265_v41 = vld [vmem:[%s5021_s5 + $0xa0] sm:$0xff] }
  0x7f   :  { %v1362_v62 = vpop.permute.xlu0 %1361  ;;  %v1434_v13 = vsel %vm1369_vm1, %v1364_v6, 0 }
  0x80   :  { %395 = vperm.xlu1 %3381, %v161_v43   ;;  %v1431_v5 = vsel %vm1369_vm1, %v1362_v62, 0  ;;  %v2266_v43 = vld [vmem:[%s5021_s5 + $0xa8] sm:$0xff] }
  0x81   :  { %400 = vperm.xlu0 %3380, %v162_v44   ;;  %3301 = vmatpush3.bf16.xpose.msra.mxu1 %v1422_v45  ;;  %v3417_v45 = vld [vmem:[%s5022_s4 + $0x18] sm:$0xff]  }
  0x82   :  { %3372 = vmatprep.subr.msk.bf16.mxu1 %vm1369_vm1, %v1358_v46  ;;  %v1368_v27 = vpop.permute.xlu1 %1367  ;;  %v2267_v46 = vld [vmem:[%s5021_s5 + $0xb0] sm:$0xff] }
  0x83   :  { %v1366_v14 = vpop.permute.xlu0 %1365  ;;  %v1440_v30 = vsel %vm1369_vm1, %v1368_v27, 0 }
  0x84   :  { %485 = vperm.xlu1 %3381, %v179_v47   ;;  %v1437_v20 = vsel %vm1369_vm1, %v1366_v14, 0  ;;  %v3418_v47 = vld [vmem:[%s5022_s4 + $0x20] sm:$0xff]  }
  0x85   :  { %490 = vperm.xlu0 %3380, %v180_v49   ;;  %3267 = vmatmul.mubr.msk.bf16.gmra.mrb[32].mxu0 %vm663_vm0, %v3399_v48  ;;  %v2268_v49 = vld [vmem:[%s5021_s5 + $0xb8] sm:$0xff] }
  0x86   :  { %3270 = vmatprep.mubr.msk.bf16.mxu0 %vm663_vm0, %v3400_v50  ;;  %v2269_v50 = vld [vmem:[%s5021_s5 + $0xc0] sm:$0xff] }
  0x88   :  { %405 = vperm.xlu1 %3381, %v163_v51  }
  0x89   :  { %410 = vperm.xlu0 %3380, %v164_v52   ;;  %3303 = vmatpush3.bf16.xpose.msra.mxu1 %v1425_v53  ;;  %v2270_v52 = vld [vmem:[%s5021_s5 + $0xc8] sm:$0xff] }
  0x8a   :  { %3373 = vmatprep.subr.msk.bf16.mxu1 %vm1369_vm1, %v1360_v54  ;;  %v3419_v54 = vld [vmem:[%s5022_s4 + $0x28] sm:$0xff]  }
  0x8c   :  { %495 = vperm.xlu1 %3381, %v181_v55   ;;  %v2271_v55 = vld [vmem:[%s5021_s5 + $0xd0] sm:$0xff] }
  0x8d   :  { %500 = vperm.xlu0 %3380, %v182_v57   ;;  %3271 = vmatmul.mubr.msk.bf16.gmra.mrb[36].mxu0 %vm663_vm0, %v3401_v56  ;;  %v3420_v56 = vld [vmem:[%s5022_s4 + $0x30] sm:$0xff]   ;;  %v2272_v57 = vld [vmem:[%s5021_s5 + $0xd8] sm:$0xff] }
  0x8e   :  { %3274 = vmatprep.mubr.msk.bf16.mxu0 %vm663_vm0, %v3402_v58 }
  0x90   :  { %415 = vperm.xlu1 %3381, %v165_v59   ;;  %v2501_v59 = vld [vmem:[%s5023_s6] sm:$0xff] }
  0x91   :  { %420 = vperm.xlu0 %3380, %v166_v60   ;;  %3305 = vmatpush3.bf16.xpose.msra.mxu1 %v1428_v61  ;;  %v2502_v61 = vld [vmem:[%s5023_s6 + $0x8] sm:$0xff] }
  0x92   :  { %3374 = vmatprep.subr.msk.bf16.mxu1 %vm1369_vm1, %v1362_v62  ;;  %v3421_v62 = vld [vmem:[%s5022_s4 + $0x38] sm:$0xff]  }
  0x93   :  { %v4048_v38 = vpop.permute.xlu1 %190 }
  0x94   :  { %2279 = vperm.xlu1 %3381, %v2245_v63   ;;  %v4054_v40 = vpop.permute.xlu0 %185  ;;  %v2503_v63 = vld [vmem:[%s5023_s6 + $0x10] sm:$0xff] }
  0x95   :  { %2284 = vperm.xlu0 %3380, %v2246_v1   ;;  %3275 = vmatmul.mubr.msk.bf16.gmra.mrb[40].mxu0 %vm663_vm0, %v3403_v0  ;;  %v3422_v0 = vld [vmem:[%s5022_s4 + $0x40] sm:$0xff]  }
  0x96   :  { %3278 = vmatprep.mubr.msk.bf16.mxu0 %vm663_vm0, %v3404_v2  ;;  %v2504_v2 = vld [vmem:[%s5023_s6 + $0x18] sm:$0xff] }
  0x97   :  { %v4067_v44 = vpop.permute.xlu1 %195 }
  0x98   :  { %2289 = vperm.xlu1 %3381, %v2247_v3   ;;  %v4079_v48 = vpop.permute.xlu0 %200 }
  0x99   :  { %2294 = vperm.xlu0 %3380, %v2248_v4   ;;  %3307 = vmatpush3.bf16.xpose.msra.mxu1 %v1431_v5  ;;  %v2505_v4 = vld [vmem:[%s5023_s6 + $0x20] sm:$0xff]  ;;  %v2506_v5 = vld [vmem:[%s5023_s6 + $0x28] sm:$0xff] }
  0x9a   :  { %3375 = vmatprep.subr.msk.bf16.mxu1 %vm1369_vm1, %v1364_v6 }
  0x9b   :  { %v4089_v51 = vpop.permute.xlu1 %265 }
  0x9c   :  { %2299 = vperm.xlu1 %3381, %v2249_v7   ;;  %v4094_v53 = vpop.permute.xlu0 %270  ;;  %v3423_v7 = vld [vmem:[%s5022_s4 + $0x48] sm:$0xff]  }
  0x9d   :  { %2304 = vperm.xlu0 %3380, %v2250_v9   ;;  %3279 = vmatmul.mubr.msk.bf16.gmra.mrb[44].mxu0 %vm663_vm0, %v3405_v8  ;;  %v2507_v8 = vld [vmem:[%s5023_s6 + $0x30] sm:$0xff] }
  0x9e   :  { %3282 = vmatprep.mubr.msk.bf16.mxu0 %vm663_vm0, %v3406_v10  ;;  %v3424_v9 = vld [vmem:[%s5022_s4 + $0x50] sm:$0xff]  }
  0x9f   :  { %v4108_v58 = vpop.permute.xlu1 %275 }
  0xa0   :  { %2309 = vperm.xlu1 %3381, %v2251_v11   ;;  %v4115_v60 = vpop.permute.xlu0 %280  ;;  %v2508_v11 = vld [vmem:[%s5023_s6 + $0x38] sm:$0xff] }
  0xa1   :  { %2314 = vperm.xlu0 %3380, %v2252_v12   ;;  %3309 = vmatpush3.bf16.xpose.msra.mxu1 %v1434_v13  ;;  %v2509_v12 = vld [vmem:[%s5023_s6 + $0x40] sm:$0xff] }
  0xa2   :  { %3376 = vmatprep.subr.msk.bf16.mxu1 %vm1369_vm1, %v1366_v14  ;;  %v2510_v14 = vld [vmem:[%s5023_s6 + $0x48] sm:$0xff] }
  0xa3   :  { %v4129_v1 = vpop.permute.xlu1 %285 }
  0xa4   :  { %2319 = vperm.xlu1 %3381, %v2253_v15   ;;  %v4134_v3 = vpop.permute.xlu0 %290 }
  0xa5   :  { %2324 = vperm.xlu0 %3380, %v2254_v18   ;;  %3283 = vmatmul.mubr.msk.bf16.gmra.mrb[48].mxu0 %vm663_vm0, %v3407_v16  ;;  %v3425_v16 = vld [vmem:[%s5022_s4 + $0x58] sm:$0xff]   ;;  %v3426_v18 = vld [vmem:[%s5022_s4 + $0x60] sm:$0xff]  }
  0xa6   :  { %3286 = vmatprep.mubr.msk.bf16.mxu0 %vm663_vm0, %v3408_v19  ;;  %v2512_v19 = vld [vmem:[%s5023_s6 + $0x58] sm:$0xff] }
  0xa7   :  { %v4144_v6 = vpop.permute.xlu1 %205 }
  0xa8   :  { %2329 = vperm.xlu1 %3381, %v2255_v21   ;;  %v4155_v10 = vpop.permute.xlu0 %210 }
  0xa9   :  { %2334 = vperm.xlu0 %3380, %v2256_v22   ;;  %3311 = vmatpush3.bf16.xpose.msra.mxu1 %v1437_v20  ;;  %v2513_v20 = vld [vmem:[%s5023_s6 + $0x60] sm:$0xff]  ;;  %v2514_v22 = vld [vmem:[%s5023_s6 + $0x68] sm:$0xff] }
  0xaa   :  { %3377 = vmatprep.subr.msk.bf16.mxu1 %vm1369_vm1, %v1368_v27  ;;  %v2516_v27 = vld [vmem:[%s5023_s6 + $0x78] sm:$0xff] }
  0xab   :  { %v4165_v13 = vpop.permute.xlu1 %295 }
  0xac   :  { %2339 = vperm.xlu1 %3381, %v2257_v23   ;;  %v4170_v15 = vpop.permute.xlu0 %300 }
  0xad   :  { %2344 = vperm.xlu0 %3380, %v2258_v25   ;;  %3287 = vmatmul.mubr.msk.bf16.gmra.mrb[52].mxu0 %vm663_vm0, %v3409_v24  ;;  %v3427_v24 = vld [vmem:[%s5022_s4 + $0x68] sm:$0xff]   ;;  %v2515_v25 = vld [vmem:[%s5023_s6 + $0x70] sm:$0xff] }
  0xae   :  { %3290 = vmatprep.mubr.msk.bf16.mxu0 %vm663_vm0, %v3410_v26  ;;  %v3428_v26 = vld [vmem:[%s5022_s4 + $0x70] sm:$0xff]  }
  0xaf   :  { %v4187_v21 = vpop.permute.xlu1 %215 }
  0xb0   :  { %2349 = vperm.xlu1 %3381, %v2259_v28   ;;  %v4194_v23 = vpop.permute.xlu0 %220 }
  0xb1   :  { %2354 = vperm.xlu0 %3380, %v2260_v29   ;;  %3313 = vmatpush3.bf16.xpose.msra.mxu1 %v1440_v30  ;;  %v2517_v29 = vld [vmem:[%s5023_s6 + $0x80] sm:$0xff] }
  0xb3   :  { %v4208_v28 = vpop.permute.xlu1 %305 }
  0xb4   :  { %2359 = vperm.xlu1 %3381, %v2261_v31   ;;  %v4213_v30 = vpop.permute.xlu0 %310  ;;  %v2518_v31 = vld [vmem:[%s5023_s6 + $0x88] sm:$0xff] }
  0xb5   :  { %2364 = vperm.xlu0 %3380, %v2262_v33   ;;  %3291 = vmatmul.mubr.msk.bf16.gmra.mrb[56].mxu0 %vm663_vm0, %v3411_v32  ;;  %v3429_v32 = vld [vmem:[%s5022_s4 + $0x78] sm:$0xff]   ;;  %v2519_v33 = vld [vmem:[%s5023_s6 + $0x90] sm:$0xff] }
  0xb6   :  { %3294 = vmatprep.mubr.msk.bf16.mxu0 %vm663_vm0, %v3412_v34  ;;  %v3432_v34 = vld [vmem:[%s5024_s3 + $0x4] ss:$16 sps:$4 sm:$0xff]  }
  0xb8   :  { %2369 = vperm.xlu1 %3381, %v2263_v36   ;;  %3315 = vmatmul.mubr.msk.bf16.vlgmr.msra.gmra.mrb[0].mxu1 %vm1369_vm1, %v3415_v35  ;;  %v4229_v35 = vpop.permute.xlu1 %225  ;;  %v2520_v36 = vld [vmem:[%s5023_s6 + $0x98] sm:$0xff] }
  0xb9   :  { %2374 = vperm.xlu0 %3380, %v2264_v39   ;;  %3318 = vmatprep.mubr.msk.bf16.mxu1 %vm1369_vm1, %v3416_v37  ;;  %v4234_v37 = vpop.permute.xlu0 %230  ;;  %v2521_v39 = vld [vmem:[%s5023_s6 + $0xa0] sm:$0xff] }
  0xbc   :  { %2379 = vperm.xlu1 %3381, %v2265_v41   ;;  %v2522_v41 = vld [vmem:[%s5023_s6 + $0xa8] sm:$0xff] }
  0xbd   :  { %2384 = vperm.xlu0 %3380, %v2266_v43   ;;  %3295 = vmatmul.mubr.msk.bf16.gmra.mrb[60].mxu0 %vm663_vm0, %v3413_v42  ;;  %v4243_v42 = vpop.permute.xlu1 %315  ;;  %v2523_v43 = vld [vmem:[%s5023_s6 + $0xb0] sm:$0xff] }
  0xc0   :  { %2389 = vperm.xlu1 %3381, %v2267_v46   ;;  %3319 = vmatmul.mubr.msk.bf16.gmra.mrb[4].mxu1 %vm1369_vm1, %v3417_v45  ;;  %v4248_v45 = vpop.permute.xlu0 %320  ;;  %v2524_v46 = vld [vmem:[%s5023_s6 + $0xb8] sm:$0xff] }
  0xc1   :  { %2394 = vperm.xlu0 %3380, %v2268_v49   ;;  %3322 = vmatprep.mubr.msk.bf16.mxu1 %vm1369_vm1, %v3418_v47  ;;  %v4253_v47 = vpop.permute.xlu1 %235  ;;  %v2525_v49 = vld [vmem:[%s5023_s6 + $0xc0] sm:$0xff] }
  0xc4   :  { %2399 = vperm.xlu1 %3381, %v2269_v50   ;;  %v4258_v50 = vpop.permute.xlu0 %240 }
  0xc5   :  { %2404 = vperm.xlu0 %3380, %v2270_v52   ;;  %v2526_v52 = vld [vmem:[%s5023_s6 + $0xc8] sm:$0xff] }
  0xc8   :  { %2409 = vperm.xlu1 %3381, %v2271_v55   ;;  %3323 = vmatmul.mubr.msk.bf16.gmra.mrb[8].mxu1 %vm1369_vm1, %v3419_v54  ;;  %v2273_v54 = vld [vmem:[%s5021_s5 + $0xe0] sm:$0xff]  ;;  %v4266_v55 = vpop.permute.xlu1 %325 }
  0xc9   :  { %2414 = vperm.xlu0 %3380, %v2272_v57   ;;  %3326 = vmatprep.mubr.msk.bf16.mxu1 %vm1369_vm1, %v3420_v56  ;;  %v2527_v56 = vld [vmem:[%s5023_s6 + $0xd0] sm:$0xff]  ;;  %v4271_v57 = vpop.permute.xlu0 %330 }
  0xcc   :  { %2535 = vperm.xlu1 %3381, %v2501_v59   ;;  %v2274_v59 = vld [vmem:[%s5021_s5 + $0xe8] sm:$0xff] }
  0xcd   :  { %2540 = vperm.xlu0 %3380, %v2502_v61   ;;  %v2528_v61 = vld [vmem:[%s5023_s6 + $0xd8] sm:$0xff] }
  0xd0   :  { %2545 = vperm.xlu1 %3381, %v2503_v63   ;;  %3327 = vmatmul.mubr.msk.bf16.gmra.mrb[12].mxu1 %vm1369_vm1, %v3421_v62  ;;  %v4279_v62 = vpop.permute.xlu1 %245  ;;  %v2275_v63 = vld [vmem:[%s5021_s5 + $0xf0] sm:$0xff] }
  0xd1   :  { %2550 = vperm.xlu0 %3380, %v2504_v2   ;;  %3330 = vmatprep.mubr.msk.bf16.mxu1 %vm1369_vm1, %v3422_v0  ;;  %v4284_v0 = vpop.permute.xlu0 %250  ;;  %v2529_v2 = vld [vmem:[%s5023_s6 + $0xe0] sm:$0xff] }
  0xd4   :  { %2555 = vperm.xlu1 %3381, %v2505_v4   ;;  %v2276_v4 = vld [vmem:[%s5021_s5 + $0xf8] sm:$0xff] }
  0xd5   :  { %2560 = vperm.xlu0 %3380, %v2506_v5   ;;  %v4292_v5 = vpop.permute.xlu1 %335 }
  0xd8   :  { %2565 = vperm.xlu1 %3381, %v2507_v8   ;;  %3331 = vmatmul.mubr.msk.bf16.gmra.mrb[16].mxu1 %vm1369_vm1, %v3423_v7  ;;  %v2530_v7 = vld [vmem:[%s5023_s6 + $0xe8] sm:$0xff]  ;;  %v4297_v8 = vpop.permute.xlu0 %340 }
  0xd9   :  { %2570 = vperm.xlu0 %3380, %v2508_v11   ;;  %3334 = vmatprep.mubr.msk.bf16.mxu1 %vm1369_vm1, %v3424_v9  ;;  %v2531_v9 = vld [vmem:[%s5023_s6 + $0xf0] sm:$0xff]  ;;  %v2532_v11 = vld [vmem:[%s5023_s6 + $0xf8] sm:$0xff] }
  0xdc   :  { %2575 = vperm.xlu1 %3381, %v2509_v12   ;;  %v256_v12 = vpop.permute.xlu1 %255 }
  0xdd   :  { %2580 = vperm.xlu0 %3380, %v2510_v14   ;;  %v261_v14 = vpop.permute.xlu0 %260 }
  0xe0   :  { %2585 = vperm.xlu1 %3381, %v2511_v17   ;;  %3335 = vmatmul.mubr.msk.bf16.gmra.mrb[20].mxu1 %vm1369_vm1, %v3425_v16  ;;  %v4305_v16 = vpop.permute.xlu1 %425 }
  0xe1   :  { %2590 = vperm.xlu0 %3380, %v2512_v19   ;;  %3338 = vmatprep.mubr.msk.bf16.mxu1 %vm1369_vm1, %v3426_v18  ;;  %v4307_v17 = vpop.permute.xlu0 %430 }
  0xe4   :  { %2595 = vperm.xlu1 %3381, %v2513_v20  }
  0xe5   :  { %2600 = vperm.xlu0 %3380, %v2514_v22  }
  0xe8   :  { %2605 = vperm.xlu1 %3381, %v2515_v25   ;;  %3339 = vmatmul.mubr.msk.bf16.gmra.mrb[24].mxu1 %vm1369_vm1, %v3427_v24 }
  0xe9   :  { %2610 = vperm.xlu0 %3380, %v2516_v27   ;;  %3342 = vmatprep.mubr.msk.bf16.mxu1 %vm1369_vm1, %v3428_v26  ;;  %v4312_v27 = vpop.permute.xlu1 %345 }
  0xec   :  { %2615 = vperm.xlu1 %3381, %v2517_v29  }
  0xed   :  { %2620 = vperm.xlu0 %3380, %v2518_v31  }
  0xf0   :  { %2625 = vperm.xlu1 %3381, %v2519_v33   ;;  %3343 = vmatmul.mubr.msk.bf16.gmra.mrb[28].mxu1 %vm1369_vm1, %v3429_v32  ;;  %v4315_v33 = vpop.permute.xlu0 %350 }
  0xf1   :  { %2630 = vperm.xlu0 %3380, %v2520_v36   ;;  %1955 = vmatprep.mubr.bf16.mxu1 %v3432_v34 }
  0xf4   :  { %2635 = vperm.xlu1 %3381, %v2521_v39  }
  0xf5   :  { %2640 = vperm.xlu0 %3380, %v2522_v41  }
  0xf8   :  { %2645 = vperm.xlu1 %3381, %v2523_v43  }
  0xf9   :  { %2650 = vperm.xlu0 %3380, %v2524_v46   ;;  %v4325_v46 = vpop.permute.xlu1 %435 }
  0xfc   :  { %2655 = vperm.xlu1 %3381, %v2525_v49  }
  0xfd   :  { %2660 = vperm.xlu0 %3380, %v2526_v52  }
 0x100   :  { %2419 = vperm.xlu1 %3381, %v2273_v54  }
 0x101   :  { %2665 = vperm.xlu0 %3380, %v2527_v56   ;;  %v4329_v56 = vpop.permute.xlu0 %440 }
 0x104   :  { %2424 = vperm.xlu1 %3381, %v2274_v59  }
 0x105   :  { %2670 = vperm.xlu0 %3380, %v2528_v61  }
 0x108   :  { %2429 = vperm.xlu1 %3381, %v2275_v63  }
 0x109   :  { %2675 = vperm.xlu0 %3380, %v2529_v2  }
 0x10c   :  { %2434 = vperm.xlu1 %3381, %v2276_v4  }
 0x10d   :  { %2680 = vperm.xlu0 %3380, %v2530_v7   ;;  %v4334_v7 = vpop.permute.xlu1 %355 }
 0x110   :  { %2685 = vperm.xlu1 %3381, %v2531_v9  }
 0x111   :  { %2690 = vperm.xlu0 %3380, %v2532_v11  }
 0x118   :  { %v3236_v18 = vpop.f32.mrb[0].mxu0 }
 0x119   :  { %v827_v19 = vadd.f32 %v3236_v18, %v4067_v44  ;;  %v818_v20 = vpop.f32.mrb[1].mxu0  ;;  %v4339_v18 = vpop.permute.xlu0 %360 }
 0x11a   :  { %v819_v22 = vadd.f32 %v818_v20, %v4054_v40  ;;  %v3237_v24 = vpop.f32.mrb[2].mxu0 }
 0x11b   :  { %v830_v25 = vadd.f32 %v3237_v24, %v4079_v48  ;;  %v821_v26 = vpop.f32.mrb[3].mxu0  ;;  %v1075_v31 = vmax.f32 %v827_v19, 0.0  ;;  %v3458_v48 = vld [vmem:[%s5024_s3 + $0xc] ss:$16 sps:$4 sm:$0xff]  }
 0x11c   :  { %v822_v29 = vadd.f32 %v821_v26, %v4048_v38  ;;  %v1073_v34 = vmax.f32 %v819_v22, 0.0  ;;  %2116 = vmatprep.mubr.bf16.mxu0 %v3458_v48 }
 0x11d   :  { %v1076_v32 = vmax.f32 %v830_v25, 0.0 }
 0x11e   :  { %v1074_v36 = vmax.f32 %v822_v29, 0.0  ;;  %v4344_v29 = vpop.permute.xlu1 %445 }
 0x11f   :  { %v4317_v39 = vpack.c.bf16 %v1076_v32, %v1075_v31 }
 0x120   :  { %v4319_v44 = vpack.c.bf16 %v1074_v36, %v1073_v34  ;;  %v3240_v41 = vpop.f32.mrb[4].mxu0 }
 0x121   :  { %v843_v40 = vadd.f32 %v3240_v41, %v4187_v21  ;;  %v834_v43 = vpop.f32.mrb[5].mxu0 }
 0x122   :  { %v835_v38 = vadd.f32 %v834_v43, %v4144_v6  ;;  %v3241_v49 = vpop.f32.mrb[6].mxu0 }
 0x123   :  { %v846_v52 = vadd.f32 %v3241_v49, %v4194_v23  ;;  %v837_v54 = vpop.f32.mrb[7].mxu0  ;;  %v1079_v61 = vmax.f32 %v843_v40, 0.0 }
 0x124   :  { %v838_v59 = vadd.f32 %v837_v54, %v4155_v10  ;;  %v1077_v63 = vmax.f32 %v835_v38, 0.0  ;;  %v4353_v38 = vpop.permute.xlu1 %365 }
 0x125   :  { %v1080_v21 = vmax.f32 %v846_v52, 0.0 }
 0x126   :  { %v1078_v2 = vmax.f32 %v838_v59, 0.0 }
 0x127   :  { %v4332_v4 = vpack.c.bf16 %v1080_v21, %v1079_v61 }
 0x128   :  { %v4336_v9 = vpack.c.bf16 %v1078_v2, %v1077_v63  ;;  %v3244_v6 = vpop.f32.mrb[8].mxu0 }
 0x129   :  { %v859_v11 = vadd.f32 %v3244_v6, %v4253_v47  ;;  %v850_v23 = vpop.f32.mrb[9].mxu0  ;;  %v4348_v47 = vpop.permute.xlu0 %450 }
 0x12a   :  { %v851_v19 = vadd.f32 %v850_v23, %v4229_v35  ;;  %v3245_v20 = vpop.f32.mrb[10].mxu0 }
 0x12b   :  { %v862_v10 = vadd.f32 %v3245_v20, %v4258_v50  ;;  %v853_v22 = vpop.f32.mrb[11].mxu0  ;;  %v1083_v25 = vmax.f32 %v859_v11, 0.0 }
 0x12c   :  { %v854_v24 = vadd.f32 %v853_v22, %v4234_v37  ;;  %v1081_v31 = vmax.f32 %v851_v19, 0.0 }
 0x12d   :  { %v1084_v26 = vmax.f32 %v862_v10, 0.0  ;;  %v4356_v59 = vpop.permute.xlu0 %370 }
 0x12e   :  { %v1082_v32 = vmax.f32 %v854_v24, 0.0 }
 0x12f   :  { %v4346_v34 = vpack.c.bf16 %v1084_v26, %v1083_v25 }
 0x130   :  { %v4350_v36 = vpack.c.bf16 %v1082_v32, %v1081_v31  ;;  %v3248_v41 = vpop.f32.mrb[12].mxu0 }
 0x131   :  { %v875_v35 = vadd.f32 %v3248_v41, %v256_v12  ;;  %v866_v40 = vpop.f32.mrb[13].mxu0  ;;  %v4367_v20 = vpop.permute.xlu0 %460 }
 0x132   :  { %v867_v50 = vadd.f32 %v866_v40, %v4279_v62  ;;  %v3249_v43 = vpop.f32.mrb[14].mxu0 }
 0x133   :  { %v878_v48 = vadd.f32 %v3249_v43, %v261_v14  ;;  %v869_v37 = vpop.f32.mrb[15].mxu0  ;;  %v1087_v52 = vmax.f32 %v875_v35, 0.0  ;;  %v4363_v14 = vpop.permute.xlu1 %455 }
 0x134   :  { %v870_v49 = vadd.f32 %v869_v37, %v4284_v0  ;;  %v1085_v61 = vmax.f32 %v867_v50, 0.0 }
 0x135   :  { %v1088_v54 = vmax.f32 %v878_v48, 0.0  ;;  %v4373_v40 = vpop.permute.xlu0 %380 }
 0x136   :  { %v1086_v21 = vmax.f32 %v870_v49, 0.0 }
 0x137   :  { %v4358_v63 = vpack.c.bf16 %v1088_v54, %v1087_v52  ;;  %v4370_v32 = vpop.permute.xlu1 %375 }
 0x138   :  { %v4360_v2 = vpack.c.bf16 %v1086_v21, %v1085_v61  ;;  %v3252_v12 = vpop.f32.mrb[16].mxu0 }
 0x139   :  { %v891_v62 = vadd.f32 %v3252_v12, %v4108_v58  ;;  %v882_v6 = vpop.f32.mrb[17].mxu0 }
 0x13a   :  { %v883_v11 = vadd.f32 %v882_v6, %v4089_v51  ;;  %v3253_v23 = vpop.f32.mrb[18].mxu0 }
 0x13b   :  { %v894_v0 = vadd.f32 %v3253_v23, %v4115_v60  ;;  %v885_v19 = vpop.f32.mrb[19].mxu0  ;;  %v1091_v22 = vmax.f32 %v891_v62, 0.0  ;;  %v4379_v52 = vpop.permute.xlu1 %465 }
 0x13c   :  { %v886_v10 = vadd.f32 %v885_v19, %v4094_v53  ;;  %v1089_v25 = vmax.f32 %v883_v11, 0.0 }
 0x13d   :  { %v1092_v24 = vmax.f32 %v894_v0, 0.0 }
 0x13e   :  { %v1090_v26 = vmax.f32 %v886_v10, 0.0 }
 0x13f   :  { %v1210_v31 = vpack.c.bf16 %v1092_v24, %v1091_v22  ;;  %v4388_v23 = vpop.permute.xlu1 %385 }
 0x140   :  { %v1209_v58 = vpack.c.bf16 %v1090_v26, %v1089_v25  ;;  %v3256_v41 = vpop.f32.mrb[20].mxu0 }
 0x141   :  { %v907_v35 = vadd.f32 %v3256_v41, %v4165_v13  ;;  %v898_v51 = vpop.f32.mrb[21].mxu0 }
 0x142   :  { %v899_v60 = vadd.f32 %v898_v51, %v4129_v1  ;;  %v3257_v50 = vpop.f32.mrb[22].mxu0  ;;  %2994 = vmatprep.subr.bf16.mxu1 %v1209_v58  ;;  %v4382_v1 = vpop.permute.xlu0 %470 }
 0x143   :  { %v910_v53 = vadd.f32 %v3257_v50, %v4170_v15  ;;  %v901_v43 = vpop.f32.mrb[23].mxu0  ;;  %2995 = vmatpush3.bf16.msra.mxu1 %v4319_v44  ;;  %v1095_v37 = vmax.f32 %v907_v35, 0.0 }
 0x144   :  { %v902_v48 = vadd.f32 %v901_v43, %v4134_v3  ;;  %2996 = vmatprep.subr.bf16.mxu1 %v1210_v31  ;;  %v1093_v13 = vmax.f32 %v899_v60, 0.0 }
 0x145   :  { %v1096_v49 = vmax.f32 %v910_v53, 0.0 }
 0x146   :  { %v1094_v54 = vmax.f32 %v902_v48, 0.0  ;;  %v4391_v10 = vpop.permute.xlu0 %390 }
 0x147   :  { %v1212_v61 = vpack.c.bf16 %v1096_v49, %v1095_v37  ;;  %2997 = vmatpush3.bf16.msra.mxu1 %v4317_v39 }
 0x148   :  { %v1211_v21 = vpack.c.bf16 %v1094_v54, %v1093_v13  ;;  %v3260_v12 = vpop.f32.mrb[24].mxu0 }
 0x149   :  { %v923_v15 = vadd.f32 %v3260_v12, %v4243_v42  ;;  %v914_v62 = vpop.f32.mrb[25].mxu0 }
 0x14a   :  { %v915_v44 = vadd.f32 %v914_v62, %v4208_v28  ;;  %v3261_v3 = vpop.f32.mrb[26].mxu0  ;;  %2998 = vmatprep.subr.bf16.mxu1 %v1211_v21  ;;  %v4400_v35 = vpop.permute.xlu0 %480 }
 0x14b   :  { %v926_v6 = vadd.f32 %v3261_v3, %v4248_v45  ;;  %v917_v11 = vpop.f32.mrb[27].mxu0  ;;  %2999 = vmatpush3.bf16.msra.mxu1 %v4336_v9  ;;  %v1099_v0 = vmax.f32 %v923_v15, 0.0  ;;  %v4395_v9 = vpop.permute.xlu1 %475 }
 0x14c   :  { %v918_v39 = vadd.f32 %v917_v11, %v4213_v30  ;;  %3000 = vmatprep.subr.bf16.mxu1 %v1212_v61  ;;  %v1097_v42 = vmax.f32 %v915_v44, 0.0 }
 0x14d   :  { %v1100_v19 = vmax.f32 %v926_v6, 0.0 }
 0x14e   :  { %v1098_v22 = vmax.f32 %v918_v39, 0.0  ;;  %v401_v49 = vpop.permute.xlu0 %400 }
 0x14f   :  { %v1214_v24 = vpack.c.bf16 %v1100_v19, %v1099_v0  ;;  %3001 = vmatpush3.bf16.msra.mxu1 %v4332_v4 }
 0x150   :  { %v1213_v28 = vpack.c.bf16 %v1098_v22, %v1097_v42  ;;  %v3264_v25 = vpop.f32.mrb[28].mxu0 }
 0x151   :  { %v939_v45 = vadd.f32 %v3264_v25, %v4292_v5  ;;  %v930_v26 = vpop.f32.mrb[29].mxu0 }
 0x152   :  { %v931_v31 = vadd.f32 %v930_v26, %v4266_v55  ;;  %v3265_v30 = vpop.f32.mrb[30].mxu0  ;;  %3002 = vmatprep.subr.bf16.mxu1 %v1213_v28  ;;  %v396_v55 = vpop.permute.xlu1 %395 }
 0x153   :  { %v942_v58 = vadd.f32 %v3265_v30, %v4297_v8  ;;  %v933_v41 = vpop.f32.mrb[31].mxu0  ;;  %3003 = vmatpush3.bf16.msra.mxu1 %v4350_v36  ;;  %v1103_v51 = vmax.f32 %v939_v45, 0.0 }
 0x154   :  { %v934_v4 = vadd.f32 %v933_v41, %v4271_v57  ;;  %3004 = vmatprep.subr.bf16.mxu1 %v1214_v24  ;;  %v1101_v5 = vmax.f32 %v931_v31, 0.0 }
 0x155   :  { %v1104_v60 = vmax.f32 %v942_v58, 0.0 }
 0x156   :  { %v1102_v50 = vmax.f32 %v934_v4, 0.0  ;;  %v4409_v12 = vpop.permute.xlu1 %485 }
 0x157   :  { %v1216_v53 = vpack.c.bf16 %v1104_v60, %v1103_v51  ;;  %3005 = vmatpush3.bf16.msra.mxu1 %v4346_v34 }
 0x158   :  { %v1215_v43 = vpack.c.bf16 %v1102_v50, %v1101_v5  ;;  %v3268_v48 = vpop.f32.mrb[32].mxu0 }
 0x159   :  { %v955_v8 = vadd.f32 %v3268_v48, %v4334_v7  ;;  %v946_v37 = vpop.f32.mrb[33].mxu0 }
 0x15a   :  { %v947_v36 = vadd.f32 %v946_v37, %v4312_v27  ;;  %v3269_v13 = vpop.f32.mrb[34].mxu0  ;;  %3006 = vmatprep.subr.bf16.mxu1 %v1215_v43  ;;  %v3430_v27 = vld [vmem:[%s5024_s3] ss:$16 sps:$4 sm:$0xff]  }
 0x15b   :  { %v958_v57 = vadd.f32 %v3269_v13, %v4339_v18  ;;  %v949_v54 = vpop.f32.mrb[35].mxu0  ;;  %3007 = vmatpush3.bf16.msra.mxu1 %v4360_v2  ;;  %v1107_v34 = vmax.f32 %v955_v8, 0.0  ;;  %v3433_v18 = vld [vmem:[%s5024_s3 + $0x24] ss:$16 sps:$4 sm:$0xff]  }
 0x15c   :  { %v950_v61 = vadd.f32 %v949_v54, %v4315_v33  ;;  %3008 = vmatprep.subr.bf16.mxu1 %v1216_v53  ;;  %v1105_v15 = vmax.f32 %v947_v36, 0.0  ;;  %v4420_v33 = vpop.permute.xlu0 %490 }
 0x15d   :  { %v1108_v21 = vmax.f32 %v958_v57, 0.0 }
 0x15e   :  { %v1106_v7 = vmax.f32 %v950_v61, 0.0 }
 0x15f   :  { %v4414_v62 = vpack.c.bf16 %v1108_v21, %v1107_v34  ;;  %3009 = vmatpush3.bf16.msra.mxu1 %v4358_v63  ;;  %v406_v63 = vpop.permute.xlu1 %405 }
 0x160   :  { %v4422_v2 = vpack.c.bf16 %v1106_v7, %v1105_v15  ;;  %v3272_v44 = vpop.f32.mrb[36].mxu0  ;;  %v411_v28 = vpop.permute.xlu0 %410 }
 0x161   :  { %v971_v3 = vadd.f32 %v3272_v44, %v4370_v32  ;;  %v962_v6 = vpop.f32.mrb[37].mxu0  ;;  %v3435_v32 = vld [vmem:[%s5024_s3 + $0x20] ss:$16 sps:$4 sm:$0xff]  }
 0x162   :  { %v963_v11 = vadd.f32 %v962_v6, %v4353_v38  ;;  %v3273_v39 = vpop.f32.mrb[38].mxu0  ;;  %1956 = vmatmul.mubr.bf16.vlgmr.msra.gmra.mrb[32].mxu1 %v3430_v27  ;;  %v3436_v38 = vld [vmem:[%s5024_s3 + $0x44] ss:$16 sps:$4 sm:$0xff]   ;;  %v3441_v6 = vld [vmem:[%s5024_s3 + $0x60] ss:$16 sps:$4 sm:$0xff]  }
 0x163   :  { %v974_v0 = vadd.f32 %v3273_v39, %v4373_v40  ;;  %v965_v19 = vpop.f32.mrb[39].mxu0  ;;  %1963 = vmatprep.mubr.bf16.mxu1 %v3433_v18  ;;  %v1111_v22 = vmax.f32 %v971_v3, 0.0  ;;  %v4438_v58 = vpop.permute.xlu1 %495  ;;  %v3442_v39 = vld [vmem:[%s5024_s3 + $0x84] ss:$16 sps:$4 sm:$0xff]  }
 0x164   :  { %v966_v42 = vadd.f32 %v965_v19, %v4356_v59  ;;  %v1109_v25 = vmax.f32 %v963_v11, 0.0  ;;  %v4441_v5 = vpop.permute.xlu0 %500 }
 0x165   :  { %v1112_v24 = vmax.f32 %v974_v0, 0.0 }
 0x166   :  { %v1110_v45 = vmax.f32 %v966_v42, 0.0 }
 0x167   :  { %v4431_v26 = vpack.c.bf16 %v1112_v24, %v1111_v22 }
 0x168   :  { %v4436_v40 = vpack.c.bf16 %v1110_v45, %v1109_v25  ;;  %v3276_v31 = vpop.f32.mrb[40].mxu0  ;;  %v421_v54 = vpop.permute.xlu0 %420 }
 0x169   :  { %v987_v30 = vadd.f32 %v3276_v31, %v396_v55  ;;  %v978_v59 = vpop.f32.mrb[41].mxu0  ;;  %v3438_v55 = vld [vmem:[%s5024_s3 + $0x40] ss:$16 sps:$4 sm:$0xff]  }
 0x16a   :  { %v979_v41 = vadd.f32 %v978_v59, %v4388_v23  ;;  %v3277_v4 = vpop.f32.mrb[42].mxu0  ;;  %1964 = vmatmul.mubr.bf16.gmra.mrb[36].mxu1 %v3435_v32  ;;  %v3439_v23 = vld [vmem:[%s5024_s3 + $0x64] ss:$16 sps:$4 sm:$0xff]   ;;  %v3444_v59 = vld [vmem:[%s5024_s3 + $0x80] ss:$16 sps:$4 sm:$0xff]  }
 0x16b   :  { %v990_v51 = vadd.f32 %v3277_v4, %v401_v49  ;;  %v981_v60 = vpop.f32.mrb[43].mxu0  ;;  %1971 = vmatprep.mubr.bf16.mxu1 %v3436_v38  ;;  %v1115_v53 = vmax.f32 %v987_v30, 0.0  ;;  %v416_v49 = vpop.permute.xlu1 %415 }
 0x16c   :  { %v982_v50 = vadd.f32 %v981_v60, %v4391_v10  ;;  %v1113_v48 = vmax.f32 %v979_v41, 0.0 }
 0x16d   :  { %v1116_v43 = vmax.f32 %v990_v51, 0.0 }
 0x16e   :  { %v1114_v8 = vmax.f32 %v982_v50, 0.0 }
 0x16f   :  { %v4447_v37 = vpack.c.bf16 %v1116_v43, %v1115_v53 }
 0x170   :  { %v4452_v36 = vpack.c.bf16 %v1114_v8, %v1113_v48  ;;  %v3280_v13 = vpop.f32.mrb[44].mxu0 }
 0x171   :  { %v1003_v57 = vadd.f32 %v3280_v13, %v416_v49  ;;  %v994_v10 = vpop.f32.mrb[45].mxu0  ;;  %v3448_v13 = vld [vmem:[%s5024_s3 + $0xc4] ss:$16 sps:$4 sm:$0xff]  }
 0x172   :  { %v995_v61 = vadd.f32 %v994_v10, %v406_v63  ;;  %v3281_v34 = vpop.f32.mrb[46].mxu0  ;;  %1972 = vmatmul.mubr.bf16.gmra.mrb[40].mxu1 %v3438_v55  ;;  %v3447_v55 = vld [vmem:[%s5024_s3 + $0xa0] ss:$16 sps:$4 sm:$0xff]  }
 0x173   :  { %v1006_v21 = vadd.f32 %v3281_v34, %v421_v54  ;;  %v997_v15 = vpop.f32.mrb[47].mxu0  ;;  %1979 = vmatprep.mubr.bf16.mxu1 %v3439_v23  ;;  %v1119_v27 = vmax.f32 %v1003_v57, 0.0 }
 0x174   :  { %v998_v7 = vadd.f32 %v997_v15, %v411_v28  ;;  %v1117_v44 = vmax.f32 %v995_v61, 0.0 }
 0x175   :  { %v1120_v18 = vmax.f32 %v1006_v21, 0.0 }
 0x176   :  { %v1118_v3 = vmax.f32 %v998_v7, 0.0 }
 0x177   :  { %v4457_v11 = vpack.c.bf16 %v1120_v18, %v1119_v27 }
 0x178   :  { %v4462_v0 = vpack.c.bf16 %v1118_v3, %v1117_v44  ;;  %v3284_v19 = vpop.f32.mrb[48].mxu0 }
 0x179   :  { %v1019_v63 = vadd.f32 %v3284_v19, %v4325_v46  ;;  %v1010_v42 = vpop.f32.mrb[49].mxu0 }
 0x17a   :  { %v1011_v22 = vadd.f32 %v1010_v42, %v4305_v16  ;;  %v3285_v24 = vpop.f32.mrb[50].mxu0  ;;  %1980 = vmatmul.mubr.bf16.gmra.mrb[44].mxu1 %v3441_v6 }
 0x17b   :  { %v1022_v28 = vadd.f32 %v3285_v24, %v4329_v56  ;;  %v1013_v25 = vpop.f32.mrb[51].mxu0  ;;  %1987 = vmatprep.mubr.bf16.mxu1 %v3442_v39  ;;  %v1123_v32 = vmax.f32 %v1019_v63, 0.0  ;;  %v3445_v56 = vld [vmem:[%s5024_s3 + $0xa4] ss:$16 sps:$4 sm:$0xff]  }
 0x17c   :  { %v1014_v45 = vadd.f32 %v1013_v25, %v4307_v17  ;;  %v1121_v31 = vmax.f32 %v1011_v22, 0.0  ;;  %v3451_v39 = vld [vmem:[%s5024_s3 + $0xe4] ss:$16 sps:$4 sm:$0xff]  }
 0x17d   :  { %v1124_v38 = vmax.f32 %v1022_v28, 0.0 }
 0x17e   :  { %v1122_v30 = vmax.f32 %v1014_v45, 0.0 }
 0x17f   :  { %v1226_v46 = vpack.c.bf16 %v1124_v38, %v1123_v32  ;;  %v3453_v32 = vld [vmem:[%s5024_s3 + $0xe0] ss:$16 sps:$4 sm:$0xff]  }
 0x180   :  { %v1225_v41 = vpack.c.bf16 %v1122_v30, %v1121_v31  ;;  %v3288_v4 = vpop.f32.mrb[52].mxu0  ;;  %v3454_v31 = vld [vmem:[%s5024_s3 + $0x104] ss:$16 sps:$4 sm:$0xff]  }
 0x181   :  { %v1035_v16 = vadd.f32 %v3288_v4, %v4363_v14  ;;  %v1026_v51 = vpop.f32.mrb[53].mxu0 }
 0x182   :  { %v1027_v17 = vadd.f32 %v1026_v51, %v4344_v29  ;;  %v3289_v60 = vpop.f32.mrb[54].mxu0  ;;  %1988 = vmatmul.mubr.bf16.gmra.mrb[48].mxu1 %v3444_v59  ;;  %3106 = vmatprep.subr.bf16.mxu0 %v1225_v41 }
 0x183   :  { %v1038_v50 = vadd.f32 %v3289_v60, %v4367_v20  ;;  %3346 = vmatprep.subr.bf16.mxu1 %v1225_v41  ;;  %v1029_v53 = vpop.f32.mrb[55].mxu0  ;;  %3107 = vmatpush3.bf16.msra.mxu0 %v4422_v2  ;;  %v1127_v14 = vmax.f32 %v1035_v16, 0.0  ;;  %v3459_v41 = vld [vmem:[%s5024_s3 + $0x100] ss:$16 sps:$4 sm:$0xff]   ;;  %v3462_v16 = vld [vmem:[%s5024_s3 + $0x2c] ss:$16 sps:$4 sm:$0xff]  }
 0x184   :  { %v1030_v43 = vadd.f32 %v1029_v53, %v4348_v47  ;;  %3354 = vmatpush3.bf16.msra.mxu1 %v4422_v2  ;;  %3108 = vmatprep.subr.bf16.mxu0 %v1226_v46  ;;  %v1125_v8 = vmax.f32 %v1027_v17, 0.0  ;;  %v3464_v60 = vld [vmem:[%s5024_s3 + $0x120] ss:$16 sps:$4 sm:$0xff]  }
 0x185   :  { %v1128_v48 = vmax.f32 %v1038_v50, 0.0  ;;  %3347 = vmatprep.subr.bf16.mxu1 %v1226_v46  ;;  %1995 = vmatprep.mubr.bf16.mxu1 %v3445_v56  ;;  %v3465_v50 = vld [vmem:[%s5024_s3 + $0x28] ss:$16 sps:$4 sm:$0xff]  }
 0x186   :  { %v1126_v29 = vmax.f32 %v1030_v43, 0.0  ;;  %v3468_v43 = vld [vmem:[%s5024_s3 + $0x4c] ss:$16 sps:$4 sm:$0xff]  }
 0x187   :  { %v1228_v20 = vpack.c.bf16 %v1128_v48, %v1127_v14  ;;  %3109 = vmatpush3.bf16.msra.mxu0 %v4414_v62 }
 0x188   :  { %v1227_v23 = vpack.c.bf16 %v1126_v29, %v1125_v8  ;;  %3355 = vmatpush3.bf16.msra.mxu1 %v4414_v62  ;;  %v3292_v47 = vpop.f32.mrb[56].mxu0  ;;  %v3470_v29 = vld [vmem:[%s5024_s3 + $0x140] ss:$16 sps:$4 sm:$0xff]  }
 0x189   :  { %v1051_v2 = vadd.f32 %v3292_v47, %v4395_v9  ;;  %v1042_v49 = vpop.f32.mrb[57].mxu0  ;;  %v3474_v47 = vld [vmem:[%s5024_s3 + $0x6c] ss:$16 sps:$4 sm:$0xff]  }
 0x18a   :  { %v1043_v57 = vadd.f32 %v1042_v49, %v4379_v52  ;;  %v3293_v10 = vpop.f32.mrb[58].mxu0  ;;  %1996 = vmatmul.mubr.bf16.gmra.mrb[52].mxu1 %v3447_v55  ;;  %3110 = vmatprep.subr.bf16.mxu0 %v1227_v23  ;;  %v3471_v55 = vld [vmem:[%s5024_s3 + $0x48] ss:$16 sps:$4 sm:$0xff]  }
 0x18b   :  { %v1054_v54 = vadd.f32 %v3293_v10, %v4400_v35  ;;  %3348 = vmatprep.subr.bf16.mxu1 %v1227_v23  ;;  %v1045_v61 = vpop.f32.mrb[59].mxu0  ;;  %3111 = vmatpush3.bf16.msra.mxu0 %v4436_v40  ;;  %v4494_v9 = vpop.f32.mrb[0].mxu1  ;;  %v1131_v34 = vmax.f32 %v1051_v2, 0.0  ;;  %v3450_v35 = vld [vmem:[%s5024_s3 + $0xc0] ss:$16 sps:$4 sm:$0xff]  }
 0x18c   :  { %v1046_v62 = vadd.f32 %v1045_v61, %v4382_v1  ;;  %3356 = vmatpush3.bf16.msra.mxu1 %v4436_v40  ;;  %3112 = vmatprep.subr.bf16.mxu0 %v1228_v20  ;;  %v4496_v52 = vpop.f32.mrb[1].mxu1  ;;  %v1129_v15 = vmax.f32 %v1043_v57, 0.0  ;;  %v3472_v23 = vld [vmem:[%s5024_s3 + $0x164] ss:$16 sps:$4 sm:$0xff]   ;;  %v3476_v57 = vld [vmem:[%s5024_s3 + $0x160] ss:$16 sps:$4 sm:$0xff]  }
 0x18d   :  { %v1132_v21 = vmax.f32 %v1054_v54, 0.0  ;;  %3349 = vmatprep.subr.bf16.mxu1 %v1228_v20  ;;  %2003 = vmatprep.mubr.bf16.mxu1 %v3448_v13  ;;  %v4501_v27 = vpop.f32.mrb[2].mxu1  ;;  %v3477_v10 = vld [vmem:[%s5024_s3 + $0x68] ss:$16 sps:$4 sm:$0xff]   ;;  %v3478_v61 = vld [vmem:[%s5024_s3 + $0x184] ss:$16 sps:$4 sm:$0xff]  }
 0x18e   :  { %v1130_v7 = vmax.f32 %v1046_v62, 0.0  ;;  %v4504_v40 = vpop.f32.mrb[3].mxu1  ;;  %v3480_v62 = vld [vmem:[%s5024_s3 + $0x8c] ss:$16 sps:$4 sm:$0xff]  }
 0x18f   :  { %v1230_v1 = vpack.c.bf16 %v1132_v21, %v1131_v34  ;;  %3113 = vmatpush3.bf16.msra.mxu0 %v4431_v26 }
 0x190   :  { %v1229_v18 = vpack.c.bf16 %v1130_v7, %v1129_v15  ;;  %3357 = vmatpush3.bf16.msra.mxu1 %v4431_v26  ;;  %v3296_v44 = vpop.f32.mrb[60].mxu0  ;;  %v3482_v7 = vld [vmem:[%s5024_s3 + $0x180] ss:$16 sps:$4 sm:$0xff]  }
 0x191   :  { %v1067_v3 = vadd.f32 %v3296_v44, %v4438_v58  ;;  %v1058_v6 = vpop.f32.mrb[61].mxu0  ;;  %v3486_v44 = vld [vmem:[%s5024_s3 + $0xac] ss:$16 sps:$4 sm:$0xff]  }
 0x192   :  { %v1059_v19 = vadd.f32 %v1058_v6, %v4409_v12  ;;  %v3297_v63 = vpop.f32.mrb[62].mxu0  ;;  %2004 = vmatmul.mubr.bf16.gmra.mrb[56].mxu1 %v3450_v35  ;;  %3114 = vmatprep.subr.bf16.mxu0 %v1229_v18  ;;  %v3483_v35 = vld [vmem:[%s5024_s3 + $0x88] ss:$16 sps:$4 sm:$0xff]  }
 0x193   :  { %v1070_v42 = vadd.f32 %v3297_v63, %v4441_v5  ;;  %3350 = vmatprep.subr.bf16.mxu1 %v1229_v18  ;;  %v1061_v22 = vpop.f32.mrb[63].mxu0  ;;  %3115 = vmatpush3.bf16.msra.mxu0 %v4452_v36  ;;  %v4514_v26 = vpop.f32.mrb[4].mxu1  ;;  %v1135_v28 = vmax.f32 %v1067_v3, 0.0  ;;  %v3484_v18 = vld [vmem:[%s5024_s3 + $0x1a4] ss:$16 sps:$4 sm:$0xff]  }
 0x194   :  { %v1062_v58 = vadd.f32 %v1061_v22, %v4420_v33  ;;  %3358 = vmatpush3.bf16.msra.mxu1 %v4452_v36  ;;  %3116 = vmatprep.subr.bf16.mxu0 %v1230_v1  ;;  %v4518_v24 = vpop.f32.mrb[5].mxu1  ;;  %v1133_v5 = vmax.f32 %v1059_v19, 0.0  ;;  %v3488_v19 = vld [vmem:[%s5024_s3 + $0x1a0] ss:$16 sps:$4 sm:$0xff]   ;;  %v3489_v63 = vld [vmem:[%s5024_s3 + $0xa8] ss:$16 sps:$4 sm:$0xff]  }
 0x195   :  { %v1136_v12 = vmax.f32 %v1070_v42, 0.0  ;;  %3351 = vmatprep.subr.bf16.mxu1 %v1230_v1  ;;  %2011 = vmatprep.mubr.bf16.mxu1 %v3451_v39  ;;  %v4520_v25 = vpop.f32.mrb[6].mxu1  ;;  %v3490_v22 = vld [vmem:[%s5024_s3 + $0x1c4] ss:$16 sps:$4 sm:$0xff]  }
 0x196   :  { %v1134_v45 = vmax.f32 %v1062_v58, 0.0  ;;  %v4525_v38 = vpop.f32.mrb[7].mxu1  ;;  %v3492_v58 = vld [vmem:[%s5024_s3 + $0xcc] ss:$16 sps:$4 sm:$0xff]  }
 0x197   :  { %v1232_v33 = vpack.c.bf16 %v1136_v12, %v1135_v28  ;;  %3117 = vmatpush3.bf16.msra.mxu0 %v4447_v37  ;;  %v3494_v28 = vld [vmem:[%s5024_s3 + $0x1c0] ss:$16 sps:$4 sm:$0xff]   ;;  %v3495_v12 = vld [vmem:[%s5024_s3 + $0xc8] ss:$16 sps:$4 sm:$0xff]  }
 0x198   :  { %v1231_v36 = vpack.c.bf16 %v1134_v45, %v1133_v5  ;;  %3359 = vmatpush3.bf16.msra.mxu1 %v4447_v37  ;;  %v3456_v37 = vld [vmem:[%s5024_s3 + $0x8] ss:$16 sps:$4 sm:$0xff]   ;;  %v3496_v5 = vld [vmem:[%s5024_s3 + $0x1e4] ss:$16 sps:$4 sm:$0xff]   ;;  %v3498_v45 = vld [vmem:[%s5024_s3 + $0xec] ss:$16 sps:$4 sm:$0xff]  }
 0x19a   :  { %2012 = vmatmul.mubr.bf16.gmra.mrb[60].mxu1 %v3453_v32  ;;  %3118 = vmatprep.subr.bf16.mxu0 %v1231_v36  ;;  %v3500_v32 = vld [vmem:[%s5024_s3 + $0x1e0] ss:$16 sps:$4 sm:$0xff]  }
 0x19b   :  { %3352 = vmatprep.subr.bf16.mxu1 %v1231_v36  ;;  %3119 = vmatpush3.bf16.msra.mxu0 %v4462_v0  ;;  %v4533_v30 = vpop.f32.mrb[8].mxu1  ;;  %v3502_v36 = vld [vmem:[%s5024_s3 + $0x10c] ss:$16 sps:$4 sm:$0xff]  }
 0x19c   :  { %3360 = vmatpush3.bf16.msra.mxu1 %v4462_v0  ;;  %3120 = vmatprep.subr.bf16.mxu0 %v1232_v33  ;;  %v4536_v59 = vpop.f32.mrb[9].mxu1  ;;  %v3460_v0 = vld [vmem:[%s5024_s3 + $0x124] ss:$16 sps:$4 sm:$0xff]  }
 0x19d   :  { %3353 = vmatprep.subr.bf16.mxu1 %v1232_v33  ;;  %2019 = vmatprep.mubr.bf16.mxu1 %v3454_v31  ;;  %v4538_v46 = vpop.f32.mrb[10].mxu1  ;;  %v3501_v33 = vld [vmem:[%s5024_s3 + $0xe8] ss:$16 sps:$4 sm:$0xff]   ;;  %v3506_v31 = vld [vmem:[%s5024_s3 + $0x18c] ss:$16 sps:$4 sm:$0xff]  }
 0x19e   :  { %v4546_v4 = vpop.f32.mrb[11].mxu1 }
 0x19f   :  { %3121 = vmatpush3.bf16.msra.mxu0 %v4457_v11 }
 0x1a0   :  { %3361 = vmatpush3.bf16.msra.mxu1 %v4457_v11  ;;  %v3466_v11 = vld [vmem:[%s5024_s3 + $0x144] ss:$16 sps:$4 sm:$0xff]  }
 0x1a2   :  { %2020 = vmatmul.mubr.bf16.gmra.mrb[64].mxu1 %v3459_v41  ;;  %2117 = vmatmul.mubr.bf16.vlgmr.msra.gmra.mrb[64].mxu0 %v3456_v37  ;;  %v3504_v37 = vld [vmem:[%s5024_s3 + $0x188] ss:$16 sps:$4 sm:$0xff]  }
 0x1a3   :  { %2027 = vmatprep.mubr.bf16.mxu1 %v3460_v0  ;;  %2124 = vmatprep.mubr.bf16.mxu0 %v3462_v16  ;;  %v4556_v51 = vpop.f32.mrb[12].mxu1  ;;  %v3507_v41 = vld [vmem:[%s5024_s3 + $0x108] ss:$16 sps:$4 sm:$0xff]   ;;  %v3508_v0 = vld [vmem:[%s5024_s3 + $0x12c] ss:$16 sps:$4 sm:$0xff]  }
 0x1a4   :  { %v4558_v56 = vpop.f32.mrb[13].mxu1  ;;  %v3510_v16 = vld [vmem:[%s5024_s3 + $0x1ac] ss:$16 sps:$4 sm:$0xff]  }
 0x1a5   :  { %v4560_v17 = vpop.f32.mrb[14].mxu1 }
 0x1a6   :  { %v4568_v53 = vpop.f32.mrb[15].mxu1 }
 0x1aa   :  { %2028 = vmatmul.mubr.bf16.gmra.mrb[68].mxu1 %v3464_v60  ;;  %2125 = vmatmul.mubr.bf16.gmra.mrb[68].mxu0 %v3465_v50  ;;  %v3512_v60 = vld [vmem:[%s5024_s3 + $0x128] ss:$16 sps:$4 sm:$0xff]  }
 0x1ab   :  { %2035 = vmatprep.mubr.bf16.mxu1 %v3466_v11  ;;  %2132 = vmatprep.mubr.bf16.mxu0 %v3468_v43  ;;  %v4576_v14 = vpop.f32.mrb[16].mxu1  ;;  %v3513_v50 = vld [vmem:[%s5024_s3 + $0x1a8] ss:$16 sps:$4 sm:$0xff]   ;;  %v3514_v11 = vld [vmem:[%s5024_s3 + $0x14c] ss:$16 sps:$4 sm:$0xff]  }
 0x1ac   :  { %v4578_v48 = vpop.f32.mrb[17].mxu1  ;;  %v3516_v43 = vld [vmem:[%s5024_s3 + $0x1cc] ss:$16 sps:$4 sm:$0xff]  }
 0x1ad   :  { %v4580_v8 = vpop.f32.mrb[18].mxu1 }
 0x1ae   :  { %v4588_v20 = vpop.f32.mrb[19].mxu1 }
 0x1b2   :  { %2036 = vmatmul.mubr.bf16.gmra.mrb[72].mxu1 %v3470_v29  ;;  %2133 = vmatmul.mubr.bf16.gmra.mrb[72].mxu0 %v3471_v55  ;;  %v3518_v29 = vld [vmem:[%s5024_s3 + $0x148] ss:$16 sps:$4 sm:$0xff]  }
 0x1b3   :  { %2043 = vmatprep.mubr.bf16.mxu1 %v3472_v23  ;;  %2140 = vmatprep.mubr.bf16.mxu0 %v3474_v47  ;;  %v4596_v2 = vpop.f32.mrb[20].mxu1  ;;  %v3519_v55 = vld [vmem:[%s5024_s3 + $0x1c8] ss:$16 sps:$4 sm:$0xff]   ;;  %v3520_v23 = vld [vmem:[%s5024_s3 + $0x16c] ss:$16 sps:$4 sm:$0xff]  }
 0x1b4   :  { %v4598_v49 = vpop.f32.mrb[21].mxu1  ;;  %v3522_v47 = vld [vmem:[%s5024_s3 + $0x1ec] ss:$16 sps:$4 sm:$0xff]  }
 0x1b5   :  { %v4600_v13 = vpop.f32.mrb[22].mxu1 }
 0x1b6   :  { %v4608_v54 = vpop.f32.mrb[23].mxu1 }
 0x1ba   :  { %2044 = vmatmul.mubr.bf16.gmra.mrb[76].mxu1 %v3476_v57  ;;  %2141 = vmatmul.mubr.bf16.gmra.mrb[76].mxu0 %v3477_v10  ;;  %v3524_v57 = vld [vmem:[%s5024_s3 + $0x168] ss:$16 sps:$4 sm:$0xff]  }
 0x1bb   :  { %2051 = vmatprep.mubr.bf16.mxu1 %v3478_v61  ;;  %2148 = vmatprep.mubr.bf16.mxu0 %v3480_v62  ;;  %v4616_v34 = vpop.f32.mrb[24].mxu1  ;;  %v3525_v10 = vld [vmem:[%s5024_s3 + $0x1e8] ss:$16 sps:$4 sm:$0xff]   ;;  %v4722_v61 = vpop.permute.xlu1 %2279 }
 0x1bc   :  { %v4618_v21 = vpop.f32.mrb[25].mxu1  ;;  %v4724_v62 = vpop.permute.xlu0 %2284 }
 0x1bd   :  { %v4620_v15 = vpop.f32.mrb[26].mxu1 }
 0x1be   :  { %v4628_v1 = vpop.f32.mrb[27].mxu1 }
 0x1c2   :  { %2052 = vmatmul.mubr.bf16.gmra.mrb[80].mxu1 %v3482_v7  ;;  %2149 = vmatmul.mubr.bf16.gmra.mrb[80].mxu0 %v3483_v35  ;;  %v4726_v7 = vpop.permute.xlu1 %2289  ;;  %v4728_v35 = vpop.permute.xlu0 %2294 }
 0x1c3   :  { %2059 = vmatprep.mubr.bf16.mxu1 %v3484_v18  ;;  %2156 = vmatprep.mubr.bf16.mxu0 %v3486_v44  ;;  %v4636_v3 = vpop.f32.mrb[28].mxu1 }
 0x1c4   :  { %5027 = vst [vmem:[#allocation3_spill] sm:$0xff] %v4636_v3  ;;  %v4638_v6 = vpop.f32.mrb[29].mxu1 }
 0x1c5   :  { %v4640_v39 = vpop.f32.mrb[30].mxu1 }
 0x1c6   :  { %5028 = vst [vmem:[#allocation4_spill] sm:$0xff] %v4640_v39  ;;  %v4648_v42 = vpop.f32.mrb[31].mxu1  ;;  %v4730_v18 = vpop.permute.xlu1 %2299 }
 0x1c7   :  { %v4732_v44 = vpop.permute.xlu0 %2304 }
 0x1ca   :  { %2060 = vmatmul.mubr.bf16.gmra.mrb[84].mxu1 %v3488_v19  ;;  %2157 = vmatmul.mubr.bf16.gmra.mrb[84].mxu0 %v3489_v63  ;;  %v4734_v19 = vpop.permute.xlu1 %2309 }
 0x1cb   :  { %2067 = vmatprep.mubr.bf16.mxu1 %v3490_v22  ;;  %2164 = vmatprep.mubr.bf16.mxu0 %v3492_v58  ;;  %v4736_v63 = vpop.permute.xlu0 %2314 }
 0x1ce   :  { %v4738_v22 = vpop.permute.xlu1 %2319 }
 0x1cf   :  { %v4740_v58 = vpop.permute.xlu0 %2324 }
 0x1d2   :  { %2068 = vmatmul.mubr.bf16.gmra.mrb[88].mxu1 %v3494_v28  ;;  %2165 = vmatmul.mubr.bf16.gmra.mrb[88].mxu0 %v3495_v12  ;;  %v4742_v28 = vpop.permute.xlu1 %2329 }
 0x1d3   :  { %2075 = vmatprep.mubr.bf16.mxu1 %v3496_v5  ;;  %2172 = vmatprep.mubr.bf16.mxu0 %v3498_v45  ;;  %v4744_v12 = vpop.permute.xlu0 %2334 }
 0x1da   :  { %2076 = vmatmul.mubr.bf16.gmra.mrb[92].mxu1 %v3500_v32  ;;  %2173 = vmatmul.mubr.bf16.gmra.mrb[92].mxu0 %v3501_v33  ;;  %v4746_v32 = vpop.permute.xlu1 %2339 }
 0x1db   :  { %2180 = vmatprep.mubr.bf16.mxu0 %v3502_v36  ;;  %2212 = vmatprep.mubr.bf16.mxu1 %v3506_v31  ;;  %v4748_v31 = vpop.permute.xlu0 %2344 }
 0x1dc   :  { %5029 = vst [vmem:[#allocation5_spill] sm:$0xff] %v4748_v31 }
 0x1e2   :  { %2181 = vmatmul.mubr.bf16.gmra.mrb[96].mxu0 %v3507_v41  ;;  %2213 = vmatmul.mubr.bf16.vlgmr.msra.gmra.mrb[96].mxu1 %v3504_v37 }
 0x1e3   :  { %2188 = vmatprep.mubr.bf16.mxu0 %v3508_v0  ;;  %2220 = vmatprep.mubr.bf16.mxu1 %v3510_v16 }
 0x1ea   :  { %2189 = vmatmul.mubr.bf16.gmra.mrb[100].mxu0 %v3512_v60  ;;  %2221 = vmatmul.mubr.bf16.gmra.mrb[100].mxu1 %v3513_v50  ;;  %v4756_v60 = vpop.permute.xlu1 %2349 }
 0x1eb   :  { %2196 = vmatprep.mubr.bf16.mxu0 %v3514_v11  ;;  %2228 = vmatprep.mubr.bf16.mxu1 %v3516_v43  ;;  %5030 = vst [vmem:[#allocation6_spill] sm:$0xff] %v4756_v60  ;;  %v4758_v11 = vpop.permute.xlu0 %2354 }
 0x1ec   :  { %5031 = vst [vmem:[#allocation7_spill] sm:$0xff] %v4758_v11 }
 0x1f2   :  { %2197 = vmatmul.mubr.bf16.gmra.mrb[104].mxu0 %v3518_v29  ;;  %2229 = vmatmul.mubr.bf16.gmra.mrb[104].mxu1 %v3519_v55 }
 0x1f3   :  { %2204 = vmatprep.mubr.bf16.mxu0 %v3520_v23  ;;  %2236 = vmatprep.mubr.bf16.mxu1 %v3522_v47 }
 0x1fa   :  { %2205 = vmatmul.mubr.bf16.gmra.mrb[108].mxu0 %v3524_v57  ;;  %2237 = vmatmul.mubr.bf16.gmra.mrb[108].mxu1 %v3525_v10  ;;  %v4763_v10 = vpop.permute.xlu1 %2359 }
 0x1fb   :  { %5032 = vst [vmem:[#allocation8_spill] sm:$0xff] %v4763_v10 }
 0x235   :  { %v3010_v5 = vpop.f32.mrb[32].mxu1 }
 0x236   :  { %v3011_v45 = vpop.f32.mrb[33].mxu1 }
 0x237   :  { %v3012_v33 = vadd.f32 %v3011_v45, %v3010_v5  ;;  %v3013_v36 = vpop.f32.mrb[34].mxu1 }
 0x238   :  { %v3014_v37 = vpop.f32.mrb[35].mxu1 }
 0x239   :  { %v4751_v41 = vadd.f32 %v3012_v33, %v4496_v52  ;;  %v3015_v0 = vadd.f32 %v3014_v37, %v3013_v36 }
 0x23b   :  { %v4754_v16 = vadd.f32 %v3015_v0, %v4504_v40  ;;  %v4768_v40 = vpop.permute.xlu0 %2364  ;;  %v4770_v0 = vpop.permute.xlu1 %2369 }
 0x23c   :  { %5033 = vst [vmem:[#allocation9_spill] sm:$0xff] %v4768_v40  ;;  %5034 = vst [vmem:[#allocation10_spill] sm:$0xff] %v4770_v0 }
 0x23d   :  { %v3016_v50 = vpop.f32.mrb[36].mxu1 }
 0x23e   :  { %v3017_v43 = vpop.f32.mrb[37].mxu1 }
 0x23f   :  { %v3018_v29 = vadd.f32 %v3017_v43, %v3016_v50  ;;  %v3019_v55 = vpop.f32.mrb[38].mxu1  ;;  %v4775_v43 = vpop.permute.xlu0 %2374 }
 0x240   :  { %v3020_v23 = vpop.f32.mrb[39].mxu1  ;;  %5035 = vst [vmem:[#allocation11_spill] sm:$0xff] %v4775_v43 }
 0x241   :  { %v4761_v47 = vadd.f32 %v4494_v9, %v3018_v29  ;;  %v3021_v57 = vadd.f32 %v3020_v23, %v3019_v55  ;;  %v4780_v23 = vpop.permute.xlu1 %2379 }
 0x242   :  { %5036 = vst [vmem:[#allocation12_spill] sm:$0xff] %v4780_v23 }
 0x243   :  { %v4766_v52 = vadd.f32 %v4501_v27, %v3021_v57 }
 0x245   :  { %v3022_v5 = vpop.f32.mrb[40].mxu1 }
 0x246   :  { %v3023_v45 = vpop.f32.mrb[41].mxu1 }
 0x247   :  { %v3024_v33 = vadd.f32 %v3023_v45, %v3022_v5  ;;  %v3025_v36 = vpop.f32.mrb[42].mxu1  ;;  %v4782_v5 = vpop.permute.xlu0 %2384 }
 0x248   :  { %v3026_v37 = vpop.f32.mrb[43].mxu1  ;;  %5037 = vst [vmem:[#allocation13_spill] sm:$0xff] %v4782_v5 }
 0x249   :  { %v4773_v50 = vadd.f32 %v3024_v33, %v4518_v24  ;;  %v3027_v9 = vadd.f32 %v3026_v37, %v3025_v36  ;;  %v4790_v36 = vpop.permute.xlu1 %2389 }
 0x24a   :  { %5038 = vst [vmem:[#allocation14_spill] sm:$0xff] %v4790_v36 }
 0x24b   :  { %v4778_v29 = vadd.f32 %v3027_v9, %v4525_v38  ;;  %v4792_v37 = vpop.permute.xlu0 %2394 }
 0x24c   :  { %5039 = vst [vmem:[#allocation15_spill] sm:$0xff] %v4792_v37 }
 0x24d   :  { %v3028_v27 = vpop.f32.mrb[44].mxu1  ;;  %v4797_v10 = vpop.permute.xlu1 %2399 }
 0x24e   :  { %v3029_v55 = vpop.f32.mrb[45].mxu1  ;;  %5040 = vst [vmem:[#allocation16_spill] sm:$0xff] %v4797_v10 }
 0x24f   :  { %v3030_v57 = vadd.f32 %v3029_v55, %v3028_v27  ;;  %v3031_v40 = vpop.f32.mrb[46].mxu1 }
 0x250   :  { %v3032_v45 = vpop.f32.mrb[47].mxu1 }
 0x251   :  { %v4785_v0 = vadd.f32 %v4514_v26, %v3030_v57  ;;  %v3033_v24 = vadd.f32 %v3032_v45, %v3031_v40  ;;  %v4804_v36 = vpop.permute.xlu1 %2409 }
 0x252   :  { %5042 = vst [vmem:[#allocation18_spill] sm:$0xff] %v4804_v36 }
 0x253   :  { %v4788_v33 = vadd.f32 %v4520_v25, %v3033_v24  ;;  %v4802_v25 = vpop.permute.xlu0 %2404 }
 0x254   :  { %5041 = vst [vmem:[#allocation17_spill] sm:$0xff] %v4802_v25 }
 0x255   :  { %v3034_v38 = vpop.f32.mrb[48].mxu1 }
 0x256   :  { %v3035_v9 = vpop.f32.mrb[49].mxu1 }
 0x257   :  { %v3036_v43 = vadd.f32 %v3035_v9, %v3034_v38  ;;  %v3037_v23 = vpop.f32.mrb[50].mxu1  ;;  %v2536_v9 = vpop.permute.xlu1 %2535 }
 0x258   :  { %v3038_v27 = vpop.f32.mrb[51].mxu1 }
 0x259   :  { %v4795_v55 = vadd.f32 %v3036_v43, %v4536_v59  ;;  %v3039_v5 = vadd.f32 %v3038_v27, %v3037_v23  ;;  %v4809_v43 = vpop.permute.xlu0 %2414 }
 0x25a   :  { %5043 = vst [vmem:[#allocation19_spill] sm:$0xff] %v4809_v43 }
 0x25b   :  { %v4800_v26 = vadd.f32 %v3039_v5, %v4546_v4 }
 0x25d   :  { %v3040_v40 = vpop.f32.mrb[52].mxu1  ;;  %v2541_v10 = vpop.permute.xlu0 %2540 }
 0x25e   :  { %v3041_v57 = vpop.f32.mrb[53].mxu1 }
 0x25f   :  { %v3042_v45 = vadd.f32 %v3041_v57, %v3040_v40  ;;  %v3043_v24 = vpop.f32.mrb[54].mxu1 }
 0x260   :  { %v3044_v37 = vpop.f32.mrb[55].mxu1 }
 0x261   :  { %v4807_v38 = vadd.f32 %v4533_v30, %v3042_v45  ;;  %v3045_v59 = vadd.f32 %v3044_v37, %v3043_v24  ;;  %v2546_v37 = vpop.permute.xlu1 %2545  ;;  %v4820_v24 = vpop.permute.xlu0 %2550 }
 0x263   :  { %v4812_v23 = vadd.f32 %v4538_v46, %v3045_v59 }
 0x265   :  { %v3046_v4 = vpop.f32.mrb[56].mxu1 }
 0x266   :  { %v3047_v5 = vpop.f32.mrb[57].mxu1 }
 0x267   :  { %v3048_v27 = vadd.f32 %v3047_v5, %v3046_v4  ;;  %v3049_v25 = vpop.f32.mrb[58].mxu1 }
 0x268   :  { %v3050_v40 = vpop.f32.mrb[59].mxu1 }
 0x269   :  { %v4815_v57 = vadd.f32 %v3048_v27, %v4558_v56  ;;  %v3051_v36 = vadd.f32 %v3050_v40, %v3049_v25  ;;  %v4828_v56 = vpop.permute.xlu1 %2555  ;;  %v4830_v25 = vpop.permute.xlu0 %2560 }
 0x26b   :  { %v4818_v30 = vadd.f32 %v3051_v36, %v4568_v53 }
 0x26d   :  { %5044 = vst [vmem:[#allocation20_spill] sm:$0xff] %v4818_v30  ;;  %v3052_v45 = vpop.f32.mrb[60].mxu1 }
 0x26e   :  { %v3053_v46 = vpop.f32.mrb[61].mxu1 }
 0x26f   :  { %v3054_v59 = vadd.f32 %v3053_v46, %v3052_v45  ;;  %v3055_v43 = vpop.f32.mrb[62].mxu1 }
 0x270   :  { %v3056_v11 = vpop.f32.mrb[63].mxu1 }
 0x271   :  { %v4823_v4 = vadd.f32 %v4556_v51, %v3054_v59  ;;  %v3057_v5 = vadd.f32 %v3056_v11, %v3055_v43 }
 0x273   :  { %v4826_v39 = vadd.f32 %v4560_v17, %v3057_v5 }
 0x275   :  { %5045 = vst [vmem:[#allocation21_spill] sm:$0xff] %v4826_v39  ;;  %v3122_v53 = vpop.f32.mrb[64].mxu0  ;;  %v3058_v36 = vpop.f32.mrb[64].mxu1 }
 0x276   :  { %v3123_v27 = vpop.f32.mrb[65].mxu0  ;;  %v3059_v40 = vpop.f32.mrb[65].mxu1 }
 0x277   :  { %v3124_v60 = vadd.f32 %v3123_v27, %v3122_v53  ;;  %v3125_v3 = vpop.f32.mrb[66].mxu0  ;;  %v3060_v45 = vadd.f32 %v3059_v40, %v3058_v36  ;;  %v3061_v46 = vpop.f32.mrb[66].mxu1 }
 0x278   :  { %v3126_v31 = vpop.f32.mrb[67].mxu0  ;;  %v3062_v30 = vpop.f32.mrb[67].mxu1 }
 0x279   :  { %v2119_v51 = vadd.f32 %v3124_v60, %v4751_v41  ;;  %v3127_v11 = vadd.f32 %v3126_v31, %v3125_v3  ;;  %v4834_v17 = vadd.f32 %v3060_v45, %v4578_v48  ;;  %v3063_v43 = vadd.f32 %v3062_v30, %v3061_v46  ;;  %v4841_v53 = vpop.permute.xlu1 %2565  ;;  %v4843_v36 = vpop.permute.xlu0 %2570 }
 0x27b   :  { %5046 = vst [vmem:[#allocation22_spill] sm:$0xff] %v4834_v17  ;;  %v2437_v59 = vadd.f32 %v4722_v61, %v2119_v51  ;;  %v2122_v5 = vadd.f32 %v3127_v11, %v4754_v16  ;;  %v4839_v39 = vadd.f32 %v3063_v43, %v4588_v20 }
 0x27d   :  { %5047 = vst [vmem:[#allocation23_spill] sm:$0xff] %v4839_v39  ;;  %v2469_v27 = vmax.f32 %v2437_v59, 0.0  ;;  %v2438_v40 = vadd.f32 %v4724_v62, %v2122_v5  ;;  %v3128_v41 = vpop.f32.mrb[68].mxu0  ;;  %v3064_v3 = vpop.f32.mrb[68].mxu1 }
 0x27e   :  { %v3129_v31 = vpop.f32.mrb[69].mxu0  ;;  %v3065_v48 = vpop.f32.mrb[69].mxu1 }
 0x27f   :  { %v2470_v60 = vmax.f32 %v2438_v40, 0.0  ;;  %v3130_v30 = vadd.f32 %v3129_v31, %v3128_v41  ;;  %v3131_v45 = vpop.f32.mrb[70].mxu0  ;;  %v3066_v61 = vadd.f32 %v3065_v48, %v3064_v3  ;;  %v3067_v46 = vpop.f32.mrb[70].mxu1  ;;  %v2693_v16 = vmul.f32 %v2536_v9, %v2469_v27 }
 0x280   :  { %v3132_v51 = vpop.f32.mrb[71].mxu0  ;;  %v3068_v20 = vpop.f32.mrb[71].mxu1 }
 0x281   :  { %v2694_v11 = vmul.f32 %v2541_v10, %v2470_v60  ;;  %v2127_v43 = vadd.f32 %v3130_v30, %v4761_v47  ;;  %v3133_v39 = vadd.f32 %v3132_v51, %v3131_v45  ;;  %v4848_v59 = vadd.f32 %v4576_v14, %v3066_v61  ;;  %v4852_v41 = vpop.permute.xlu1 %2575  ;;  %v4854_v3 = vpop.permute.xlu0 %2580 }
 0x282   :  { %v3069_v62 = vadd.f32 %v3068_v20, %v3067_v46 }
 0x283   :  { %v2725_v5 = vadd.f32 %v2694_v11, %v2693_v16  ;;  %v2439_v17 = vadd.f32 %v4726_v7, %v2127_v43  ;;  %v2130_v40 = vadd.f32 %v3133_v39, %v4766_v52 }
 0x284   :  { %v4857_v9 = vadd.f32 %v4580_v8, %v3069_v62 }
 0x285   :  { %v2471_v10 = vmax.f32 %v2439_v17, 0.0  ;;  %v2440_v47 = vadd.f32 %v4728_v35, %v2130_v40  ;;  %v3134_v27 = vpop.f32.mrb[72].mxu0  ;;  %v3070_v31 = vpop.f32.mrb[72].mxu1 }
 0x286   :  { %v3135_v14 = vpop.f32.mrb[73].mxu0  ;;  %v3071_v48 = vpop.f32.mrb[73].mxu1 }
 0x287   :  { %v2695_v60 = vmul.f32 %v2546_v37, %v2471_v10  ;;  %v2472_v30 = vmax.f32 %v2440_v47, 0.0  ;;  %v3136_v45 = vadd.f32 %v3135_v14, %v3134_v27  ;;  %v3137_v7 = vpop.f32.mrb[74].mxu0  ;;  %v3072_v61 = vadd.f32 %v3071_v48, %v3070_v31  ;;  %v3073_v39 = vpop.f32.mrb[74].mxu1 }
 0x288   :  { %v3138_v52 = vpop.f32.mrb[75].mxu0  ;;  %v3074_v46 = vpop.f32.mrb[75].mxu1 }
 0x289   :  { %v2726_v16 = vadd.f32 %v2725_v5, %v2695_v60  ;;  %v2696_v51 = vmul.f32 %v4820_v24, %v2472_v30  ;;  %v2135_v8 = vadd.f32 %v3136_v45, %v4773_v50  ;;  %v3139_v17 = vadd.f32 %v3138_v52, %v3137_v7  ;;  %v4867_v62 = vpop.permute.xlu1 %2585  ;;  %v4869_v40 = vpop.permute.xlu0 %2590 }
 0x28a   :  { %v4863_v35 = vadd.f32 %v3072_v61, %v4598_v49  ;;  %v3075_v20 = vadd.f32 %v3074_v46, %v3073_v39 }
 0x28b   :  { %v2727_v11 = vadd.f32 %v2726_v16, %v2696_v51  ;;  %v2441_v37 = vadd.f32 %v4730_v18, %v2135_v8  ;;  %v2138_v43 = vadd.f32 %v3139_v17, %v4778_v29 }
 0x28c   :  { %v4872_v5 = vadd.f32 %v3075_v20, %v4608_v54 }
 0x28d   :  { %v2473_v24 = vmax.f32 %v2441_v37, 0.0  ;;  %v2442_v50 = vadd.f32 %v4732_v44, %v2138_v43  ;;  %v3076_v10 = vpop.f32.mrb[76].mxu1  ;;  %v3140_v47 = vpop.f32.mrb[76].mxu0 }
 0x28e   :  { %v3077_v49 = vpop.f32.mrb[77].mxu1  ;;  %v3141_v27 = vpop.f32.mrb[77].mxu0 }
 0x28f   :  { %v2697_v31 = vmul.f32 %v4828_v56, %v2473_v24  ;;  %v2474_v14 = vmax.f32 %v2442_v50, 0.0  ;;  %v3078_v18 = vadd.f32 %v3077_v49, %v3076_v10  ;;  %v3142_v48 = vadd.f32 %v3141_v27, %v3140_v47  ;;  %v3079_v29 = vpop.f32.mrb[78].mxu1  ;;  %v3143_v60 = vpop.f32.mrb[78].mxu0 }
 0x290   :  { %v3080_v30 = vpop.f32.mrb[79].mxu1  ;;  %v3144_v45 = vpop.f32.mrb[79].mxu0 }
 0x291   :  { %v2728_v7 = vadd.f32 %v2727_v11, %v2697_v31  ;;  %v2698_v54 = vmul.f32 %v4830_v25, %v2474_v14  ;;  %v4878_v61 = vadd.f32 %v4596_v2, %v3078_v18  ;;  %v2143_v44 = vadd.f32 %v3142_v48, %v4785_v0  ;;  %v4882_v16 = vpop.permute.xlu1 %2595  ;;  %v4884_v51 = vpop.permute.xlu0 %2600 }
 0x292   :  { %v3081_v39 = vadd.f32 %v3080_v30, %v3079_v29  ;;  %v3145_v52 = vadd.f32 %v3144_v45, %v3143_v60 }
 0x293   :  { %v2729_v46 = vadd.f32 %v2728_v7, %v2698_v54  ;;  %v2443_v56 = vadd.f32 %v4734_v19, %v2143_v44 }
 0x294   :  { %v4887_v8 = vadd.f32 %v4600_v13, %v3081_v39  ;;  %v2146_v17 = vadd.f32 %v3145_v52, %v4788_v33 }
 0x295   :  { %v2475_v25 = vmax.f32 %v2443_v56, 0.0  ;;  %v3082_v20 = vpop.f32.mrb[80].mxu1  ;;  %v3146_v2 = vpop.f32.mrb[80].mxu0 }
 0x296   :  { %v2444_v11 = vadd.f32 %v4736_v63, %v2146_v17  ;;  %v3083_v0 = vpop.f32.mrb[81].mxu1  ;;  %v3147_v37 = vpop.f32.mrb[81].mxu0 }
 0x297   :  { %v2699_v43 = vmul.f32 %v4841_v53, %v2475_v25  ;;  %v3084_v24 = vadd.f32 %v3083_v0, %v3082_v20  ;;  %v3148_v19 = vadd.f32 %v3147_v37, %v3146_v2  ;;  %v3085_v50 = vpop.f32.mrb[82].mxu1  ;;  %v3149_v10 = vpop.f32.mrb[82].mxu0 }
 0x298   :  { %v2476_v47 = vmax.f32 %v2444_v11, 0.0  ;;  %v3086_v49 = vpop.f32.mrb[83].mxu1  ;;  %v3150_v27 = vpop.f32.mrb[83].mxu0 }
 0x299   :  { %v2730_v13 = vadd.f32 %v2729_v46, %v2699_v43  ;;  %v4893_v31 = vadd.f32 %v3084_v24, %v4618_v21  ;;  %v2151_v33 = vadd.f32 %v3148_v19, %v4795_v55  ;;  %v3087_v14 = vadd.f32 %v3086_v49, %v3085_v50  ;;  %v4901_v29 = vpop.permute.xlu1 %2605  ;;  %v4903_v60 = vpop.permute.xlu0 %2610 }
 0x29a   :  { %v2700_v63 = vmul.f32 %v4843_v36, %v2476_v47  ;;  %v3151_v18 = vadd.f32 %v3150_v27, %v3149_v10 }
 0x29b   :  { %v2445_v48 = vadd.f32 %v4738_v22, %v2151_v33  ;;  %v4899_v53 = vadd.f32 %v3087_v14, %v4628_v1 }
 0x29c   :  { %v2731_v30 = vadd.f32 %v2730_v13, %v2700_v63  ;;  %v2154_v45 = vadd.f32 %v3151_v18, %v4800_v26 }
 0x29d   :  { %v2477_v21 = vmax.f32 %v2445_v48, 0.0  ;;  %v3088_v7 = vpop.f32.mrb[84].mxu1  ;;  %v3152_v54 = vpop.f32.mrb[84].mxu0 }
 0x29e   :  { %v2446_v55 = vadd.f32 %v4740_v58, %v2154_v45  ;;  %v3089_v44 = vpop.f32.mrb[85].mxu1  ;;  %v3153_v36 = vpop.f32.mrb[85].mxu0 }
 0x29f   :  { %v2701_v39 = vmul.f32 %v4852_v41, %v2477_v21  ;;  %v3090_v22 = vadd.f32 %v3089_v44, %v3088_v7  ;;  %v3154_v52 = vadd.f32 %v3153_v36, %v3152_v54  ;;  %v3091_v1 = vpop.f32.mrb[86].mxu1  ;;  %v3155_v46 = vpop.f32.mrb[86].mxu0  ;;  %v5048_v36 = vld [vmem:[#allocation20_spill] sm:$0xff] }
 0x2a0   :  { %v2478_v56 = vmax.f32 %v2446_v55, 0.0  ;;  %v3092_v17 = vpop.f32.mrb[87].mxu1  ;;  %v3156_v25 = vpop.f32.mrb[87].mxu0 }
 0x2a1   :  { %v2732_v20 = vadd.f32 %v2731_v30, %v2701_v39  ;;  %v4909_v2 = vadd.f32 %v4616_v34, %v3090_v22  ;;  %v2159_v26 = vadd.f32 %v3154_v52, %v4807_v38  ;;  %v3093_v11 = vadd.f32 %v3092_v17, %v3091_v1  ;;  %v4917_v43 = vpop.permute.xlu1 %2615  ;;  %v4919_v24 = vpop.permute.xlu0 %2620 }
 0x2a2   :  { %v2702_v58 = vmul.f32 %v4854_v3, %v2478_v56  ;;  %v3157_v0 = vadd.f32 %v3156_v25, %v3155_v46 }
 0x2a3   :  { %v2447_v37 = vadd.f32 %v4742_v28, %v2159_v26  ;;  %v4915_v41 = vadd.f32 %v4620_v15, %v3093_v11 }
 0x2a4   :  { %v2733_v19 = vadd.f32 %v2732_v20, %v2702_v58  ;;  %v2162_v50 = vadd.f32 %v3157_v0, %v4812_v23  ;;  %v5050_v0 = vld [vmem:[#allocation3_spill] sm:$0xff] }
 0x2a5   :  { %v2479_v34 = vmax.f32 %v2447_v37, 0.0  ;;  %v3094_v10 = vpop.f32.mrb[88].mxu1  ;;  %v3158_v47 = vpop.f32.mrb[88].mxu0 }
 0x2a6   :  { %v2448_v38 = vadd.f32 %v4744_v12, %v2162_v50  ;;  %v3095_v49 = vpop.f32.mrb[89].mxu1  ;;  %v3159_v3 = vpop.f32.mrb[89].mxu0 }
 0x2a7   :  { %v2703_v27 = vmul.f32 %v4867_v62, %v2479_v34  ;;  %v3096_v28 = vadd.f32 %v3095_v49, %v3094_v10  ;;  %v3160_v13 = vadd.f32 %v3159_v3, %v3158_v47  ;;  %v3097_v15 = vpop.f32.mrb[90].mxu1  ;;  %v3161_v33 = vpop.f32.mrb[90].mxu0  ;;  %v5051_v47 = vld [vmem:[#allocation6_spill] sm:$0xff] }
 0x2a8   :  { %v2480_v14 = vmax.f32 %v2448_v38, 0.0  ;;  %v3098_v63 = vpop.f32.mrb[91].mxu1  ;;  %v3162_v18 = vpop.f32.mrb[91].mxu0 }
 0x2a9   :  { %v2734_v48 = vadd.f32 %v2733_v19, %v2703_v27  ;;  %v4925_v30 = vadd.f32 %v3096_v28, %v4638_v6  ;;  %v2167_v23 = vadd.f32 %v3160_v13, %v4815_v57  ;;  %v3099_v45 = vadd.f32 %v3098_v63, %v3097_v15  ;;  %v4933_v54 = vpop.permute.xlu1 %2625  ;;  %v4935_v55 = vpop.permute.xlu0 %2630  ;;  %v5049_v57 = vld [vmem:[#allocation5_spill] sm:$0xff] }
 0x2aa   :  { %v2704_v12 = vmul.f32 %v4869_v40, %v2480_v14  ;;  %v3163_v21 = vadd.f32 %v3162_v18, %v3161_v33  ;;  %v5053_v13 = vld [vmem:[#allocation21_spill] sm:$0xff] }
 0x2ab   :  { %v2449_v7 = vadd.f32 %v4746_v32, %v2167_v23  ;;  %v4931_v62 = vadd.f32 %v3099_v45, %v4648_v42 }
 0x2ac   :  { %v2735_v44 = vadd.f32 %v2734_v48, %v2704_v12  ;;  %v2170_v39 = vadd.f32 %v3163_v21, %v5048_v36 }
 0x2ad   :  { %v2481_v6 = vmax.f32 %v2449_v7, 0.0  ;;  %v3100_v22 = vpop.f32.mrb[92].mxu1  ;;  %v3164_v52 = vpop.f32.mrb[92].mxu0 }
 0x2ae   :  { %v2450_v1 = vadd.f32 %v5049_v57, %v2170_v39  ;;  %v3101_v46 = vpop.f32.mrb[93].mxu1  ;;  %v3165_v40 = vpop.f32.mrb[93].mxu0 }
 0x2af   :  { %v2705_v56 = vmul.f32 %v4882_v16, %v2481_v6  ;;  %v3102_v32 = vadd.f32 %v3101_v46, %v3100_v22  ;;  %v3166_v17 = vadd.f32 %v3165_v40, %v3164_v52  ;;  %v3103_v42 = vpop.f32.mrb[94].mxu1  ;;  %v3167_v25 = vpop.f32.mrb[94].mxu0  ;;  %v5052_v16 = vld [vmem:[#allocation4_spill] sm:$0xff]  ;;  %v5055_v22 = vld [vmem:[#allocation22_spill] sm:$0xff] }
 0x2b0   :  { %v2482_v20 = vmax.f32 %v2450_v1, 0.0  ;;  %v3104_v26 = vpop.f32.mrb[95].mxu1  ;;  %v3168_v11 = vpop.f32.mrb[95].mxu0 }
 0x2b1   :  { %v2736_v58 = vadd.f32 %v2735_v44, %v2705_v56  ;;  %v4941_v37 = vadd.f32 %v5050_v0, %v3102_v32  ;;  %v2175_v19 = vadd.f32 %v3166_v17, %v4823_v4  ;;  %v3105_v50 = vadd.f32 %v3104_v26, %v3103_v42  ;;  %v4949_v3 = vpop.permute.xlu1 %2635  ;;  %v4951_v27 = vpop.permute.xlu0 %2640  ;;  %v5054_v4 = vld [vmem:[#allocation7_spill] sm:$0xff]  ;;  %v5056_v56 = vld [vmem:[#allocation8_spill] sm:$0xff] }
 0x2b2   :  { %v2706_v34 = vmul.f32 %v4884_v51, %v2482_v20  ;;  %v3169_v10 = vadd.f32 %v3168_v11, %v3167_v25 }
 0x2b3   :  { %v2451_v38 = vadd.f32 %v5051_v47, %v2175_v19  ;;  %v4947_v49 = vadd.f32 %v5052_v16, %v3105_v50 }
 0x2b4   :  { %v2737_v28 = vadd.f32 %v2736_v58, %v2706_v34  ;;  %v2178_v15 = vadd.f32 %v3169_v10, %v5053_v13  ;;  %v5058_v58 = vld [vmem:[#allocation9_spill] sm:$0xff] }
 0x2b5   :  { %v2483_v33 = vmax.f32 %v2451_v38, 0.0  ;;  %v3170_v14 = vpop.f32.mrb[96].mxu0  ;;  %v3194_v63 = vpop.f32.mrb[96].mxu1 }
 0x2b6   :  { %v2452_v18 = vadd.f32 %v5054_v4, %v2178_v15  ;;  %v3171_v48 = vpop.f32.mrb[97].mxu0  ;;  %v3195_v51 = vpop.f32.mrb[97].mxu1 }
 0x2b7   :  { %v2707_v23 = vmul.f32 %v4901_v29, %v2483_v33  ;;  %v3172_v45 = vadd.f32 %v3171_v48, %v3170_v14  ;;  %v3196_v12 = vadd.f32 %v3195_v51, %v3194_v63  ;;  %v3173_v21 = vpop.f32.mrb[98].mxu0  ;;  %v3197_v7 = vpop.f32.mrb[98].mxu1  ;;  %v5057_v29 = vld [vmem:[#allocation23_spill] sm:$0xff]  ;;  %v5059_v51 = vld [vmem:[#allocation10_spill] sm:$0xff] }
 0x2b8   :  { %v2484_v44 = vmax.f32 %v2452_v18, 0.0  ;;  %v3174_v36 = vpop.f32.mrb[99].mxu0  ;;  %v3198_v39 = vpop.f32.mrb[99].mxu1 }
 0x2b9   :  { %v2738_v6 = vadd.f32 %v2737_v28, %v2707_v23  ;;  %v2183_v52 = vadd.f32 %v3172_v45, %v5055_v22  ;;  %v4958_v57 = vadd.f32 %v3196_v12, %v4893_v31  ;;  %v3175_v1 = vadd.f32 %v3174_v36, %v3173_v21  ;;  %v4963_v42 = vpop.permute.xlu1 %2645  ;;  %v4965_v25 = vpop.permute.xlu0 %2650 }
 0x2ba   :  { %v2708_v46 = vmul.f32 %v4903_v60, %v2484_v44  ;;  %v3199_v40 = vadd.f32 %v3198_v39, %v3197_v7 }
 0x2bb   :  { %v2453_v32 = vadd.f32 %v5056_v56, %v2183_v52  ;;  %v2186_v17 = vadd.f32 %v3175_v1, %v5057_v29 }
 0x2bc   :  { %v2739_v20 = vadd.f32 %v2738_v6, %v2708_v46  ;;  %v4968_v26 = vadd.f32 %v3199_v40, %v4899_v53 }
 0x2bd   :  { %v2485_v11 = vmax.f32 %v2453_v32, 0.0  ;;  %v2454_v31 = vadd.f32 %v5058_v58, %v2186_v17  ;;  %v3176_v0 = vpop.f32.mrb[100].mxu0  ;;  %v3200_v19 = vpop.f32.mrb[100].mxu1 }
 0x2be   :  { %v3177_v50 = vpop.f32.mrb[101].mxu0  ;;  %v3201_v60 = vpop.f32.mrb[101].mxu1 }
 0x2bf   :  { %v2709_v34 = vmul.f32 %v4917_v43, %v2485_v11  ;;  %v2486_v10 = vmax.f32 %v2454_v31, 0.0  ;;  %v3178_v47 = vadd.f32 %v3177_v50, %v3176_v0  ;;  %v3179_v38 = vpop.f32.mrb[102].mxu0  ;;  %v3203_v16 = vpop.f32.mrb[102].mxu1  ;;  %v3202_v28 = vadd.f32 %v3201_v60, %v3200_v19  ;;  %v5061_v31 = vld [vmem:[#allocation12_spill] sm:$0xff] }
 0x2c0   :  { %v3180_v13 = vpop.f32.mrb[103].mxu0  ;;  %v3204_v15 = vpop.f32.mrb[103].mxu1 }
 0x2c1   :  { %v2740_v33 = vadd.f32 %v2739_v20, %v2709_v34  ;;  %v2710_v53 = vmul.f32 %v4919_v24, %v2486_v10  ;;  %v2191_v14 = vadd.f32 %v3178_v47, %v4848_v59  ;;  %v3181_v63 = vadd.f32 %v3180_v13, %v3179_v38  ;;  %v4979_v45 = vpop.permute.xlu1 %2655  ;;  %v4981_v12 = vpop.permute.xlu0 %2660  ;;  %v5060_v24 = vld [vmem:[#allocation11_spill] sm:$0xff]  ;;  %v5062_v38 = vld [vmem:[#allocation13_spill] sm:$0xff] }
 0x2c2   :  { %v4975_v4 = vadd.f32 %v3202_v28, %v4909_v2  ;;  %v3205_v18 = vadd.f32 %v3204_v15, %v3203_v16 }
 0x2c3   :  { %v2741_v48 = vadd.f32 %v2740_v33, %v2710_v53  ;;  %v2455_v43 = vadd.f32 %v5059_v51, %v2191_v14  ;;  %v2194_v23 = vadd.f32 %v3181_v63, %v4857_v9 }
 0x2c4   :  { %v2226_v21 = vadd.f32 %v3205_v18, %v4915_v41 }
 0x2c5   :  { %v2487_v7 = vmax.f32 %v2455_v43, 0.0  ;;  %v2456_v44 = vadd.f32 %v5060_v24, %v2194_v23  ;;  %v3182_v59 = vpop.f32.mrb[104].mxu0  ;;  %v3206_v36 = vpop.f32.mrb[104].mxu1  ;;  %v5063_v23 = vld [vmem:[#allocation16_spill] sm:$0xff] }
 0x2c6   :  { %v3183_v39 = vpop.f32.mrb[105].mxu0  ;;  %v3207_v2 = vpop.f32.mrb[105].mxu1 }
 0x2c7   :  { %v2711_v6 = vmul.f32 %v4933_v54, %v2487_v7  ;;  %v2488_v22 = vmax.f32 %v2456_v44, 0.0  ;;  %v3184_v52 = vadd.f32 %v3183_v39, %v3182_v59  ;;  %v3208_v1 = vadd.f32 %v3207_v2, %v3206_v36  ;;  %v3185_v46 = vpop.f32.mrb[106].mxu0  ;;  %v3209_v9 = vpop.f32.mrb[106].mxu1  ;;  %v5065_v2 = vld [vmem:[#allocation17_spill] sm:$0xff] }
 0x2c8   :  { %v3186_v40 = vpop.f32.mrb[107].mxu0  ;;  %v3210_v56 = vpop.f32.mrb[107].mxu1  ;;  %v2461_v7 = vadd.f32 %v5063_v23, %v4958_v57 }
 0x2c9   :  { %v2742_v32 = vadd.f32 %v2741_v48, %v2711_v6  ;;  %v2712_v29 = vmul.f32 %v4935_v55, %v2488_v22  ;;  %v2199_v41 = vadd.f32 %v3184_v52, %v4863_v35  ;;  %v2231_v17 = vadd.f32 %v3208_v1, %v4925_v30  ;;  %v2420_v54 = vpop.permute.xlu1 %2419  ;;  %v2666_v19 = vpop.permute.xlu0 %2665  ;;  %v5067_v1 = vld [vmem:[#allocation18_spill] sm:$0xff] }
 0x2ca   :  { %v3187_v20 = vadd.f32 %v3186_v40, %v3185_v46  ;;  %v3211_v11 = vadd.f32 %v3210_v56, %v3209_v9  ;;  %v2463_v46 = vadd.f32 %v5067_v1, %v4975_v4 }
 0x2cb   :  { %v2743_v58 = vadd.f32 %v2742_v32, %v2712_v29  ;;  %v2457_v0 = vadd.f32 %v5061_v31, %v2199_v41 }
 0x2cc   :  { %v2202_v50 = vadd.f32 %v3187_v20, %v4872_v5  ;;  %v2234_v60 = vadd.f32 %v3211_v11, %v4931_v62  ;;  %v2495_v41 = vmax.f32 %v2463_v46, 0.0  ;;  %v2465_v20 = vadd.f32 %v2420_v54, %v2231_v17 }
 0x2cd   :  { %v2489_v34 = vmax.f32 %v2457_v0, 0.0  ;;  %v3188_v10 = vpop.f32.mrb[108].mxu0  ;;  %v3212_v47 = vpop.f32.mrb[108].mxu1 }
 0x2ce   :  { %v2458_v55 = vadd.f32 %v5062_v38, %v2202_v50  ;;  %v3189_v16 = vpop.f32.mrb[109].mxu0  ;;  %v3213_v35 = vpop.f32.mrb[109].mxu1 }
 0x2cf   :  { %v2713_v30 = vmul.f32 %v4949_v3, %v2489_v34  ;;  %v3190_v28 = vadd.f32 %v3189_v16, %v3188_v10  ;;  %v3214_v13 = vadd.f32 %v3213_v35, %v3212_v47  ;;  %v3191_v15 = vpop.f32.mrb[110].mxu0  ;;  %v3215_v33 = vpop.f32.mrb[110].mxu1  ;;  %v5064_v3 = vld [vmem:[#allocation14_spill] sm:$0xff]  ;;  %v2497_v34 = vmax.f32 %v2465_v20, 0.0 }
 0x2d0   :  { %v2490_v53 = vmax.f32 %v2458_v55, 0.0  ;;  %v3192_v14 = vpop.f32.mrb[111].mxu0  ;;  %v3216_v63 = vpop.f32.mrb[111].mxu1 }
 0x2d1   :  { %v2744_v18 = vadd.f32 %v2743_v58, %v2713_v30  ;;  %v2207_v5 = vadd.f32 %v3190_v28, %v4878_v61  ;;  %v2239_v62 = vadd.f32 %v3214_v13, %v4941_v37  ;;  %v3193_v48 = vadd.f32 %v3192_v14, %v3191_v15  ;;  %v2425_v59 = vpop.permute.xlu1 %2424  ;;  %v5066_v37 = vld [vmem:[#allocation15_spill] sm:$0xff]  ;;  %v2671_v52 = vpop.permute.xlu0 %2670 }
 0x2d2   :  { %v2714_v51 = vmul.f32 %v4951_v27, %v2490_v53  ;;  %v3217_v43 = vadd.f32 %v3216_v63, %v3215_v33  ;;  %v2462_v61 = vadd.f32 %v5065_v2, %v4968_v26  ;;  %v2493_v27 = vmax.f32 %v2461_v7, 0.0 }
 0x2d3   :  { %v2459_v24 = vadd.f32 %v5064_v3, %v2207_v5  ;;  %v2210_v44 = vadd.f32 %v3193_v48, %v4887_v8  ;;  %v5068_v8 = vld [vmem:[#allocation19_spill] sm:$0xff]  ;;  %v2466_v4 = vadd.f32 %v2425_v59, %v2234_v60 }
 0x2d4   :  { %v2745_v36 = vadd.f32 %v2744_v18, %v2714_v51  ;;  %v2242_v39 = vadd.f32 %v3217_v43, %v4947_v49  ;;  %v2494_v40 = vmax.f32 %v2462_v61, 0.0  ;;  %v2464_v56 = vadd.f32 %v5068_v8, %v2226_v21 }
 0x2d5   :  { %v2491_v6 = vmax.f32 %v2459_v24, 0.0  ;;  %v2460_v22 = vadd.f32 %v5066_v37, %v2210_v44  ;;  %v2430_v29 = vpop.permute.xlu1 %2429  ;;  %v2717_v26 = vmul.f32 %v4979_v45, %v2493_v27  ;;  %v2676_v58 = vpop.permute.xlu0 %2675  ;;  %v2498_v55 = vmax.f32 %v2466_v4, 0.0 }
 0x2d6   :  { %v2718_v31 = vmul.f32 %v4981_v12, %v2494_v40  ;;  %v2496_v0 = vmax.f32 %v2464_v56, 0.0  ;;  %v2467_v10 = vadd.f32 %v2430_v29, %v2239_v62  ;;  %v2721_v45 = vmul.f32 %v2676_v58, %v2497_v34 }
 0x2d7   :  { %v2715_v57 = vmul.f32 %v4963_v42, %v2491_v6  ;;  %v2492_v9 = vmax.f32 %v2460_v22, 0.0  ;;  %v2719_v42 = vmul.f32 %v2666_v19, %v2495_v41  ;;  %v2763_v51 = vstv %s5025_s7 }
 0x2d8   :  { %v2720_v38 = vmul.f32 %v2671_v52, %v2496_v0  ;;  %v2499_v30 = vmax.f32 %v2467_v10, 0.0 }
 0x2d9   :  { %v2746_v32 = vadd.f32 %v2745_v36, %v2715_v57  ;;  %v2716_v49 = vmul.f32 %v4965_v25, %v2492_v9  ;;  %v2435_v21 = vpop.permute.xlu1 %2434  ;;  %v2681_v35 = vpop.permute.xlu0 %2680 }
 0x2da   :  { %v2468_v16 = vadd.f32 %v2435_v21, %v2242_v39  ;;  %v2722_v54 = vmul.f32 %v2681_v35, %v2498_v55 }
 0x2db   :  { %v2747_v11 = vadd.f32 %v2746_v32, %v2716_v49 }
 0x2dc   :  { %v2500_v28 = vmax.f32 %v2468_v16, 0.0 }
 0x2dd   :  { %v2748_v50 = vadd.f32 %v2747_v11, %v2717_v26  ;;  %v2686_v12 = vpop.permute.xlu1 %2685  ;;  %v2691_v33 = vpop.permute.xlu0 %2690 }
 0x2de   :  { %v2723_v15 = vmul.f32 %v2686_v12, %v2499_v30  ;;  %v2724_v19 = vmul.f32 %v2691_v33, %v2500_v28 }
 0x2df   :  { %v2749_v47 = vadd.f32 %v2748_v50, %v2718_v31 }
 0x2e1   :  { %v2750_v25 = vadd.f32 %v2749_v47, %v2719_v42 }
 0x2e3   :  { %v2751_v17 = vadd.f32 %v2750_v25, %v2720_v38 }
 0x2e5   :  { %v2752_v13 = vadd.f32 %v2751_v17, %v2721_v45 }
 0x2e7   :  { %v2753_v60 = vadd.f32 %v2752_v13, %v2722_v54 }
 0x2e9   :  { %v2754_v53 = vadd.f32 %v2753_v60, %v2723_v15 }
 0x2eb   :  { %v2755_v14 = vadd.f32 %v2754_v53, %v2724_v19 }
 0x2ed   :  { %v2756_v63 = vrot.slane %v2755_v14, 4 }
 0x2ef   :  { %v2757_v18 = vadd.f32 %v2756_v63, %v2755_v14 }
 0x2f1   :  { %v2758_v5 = vrot.slane %v2757_v18, 2 }
 0x2f3   :  { %v2759_v62 = vadd.f32 %v2758_v5, %v2757_v18 }
 0x2f5   :  { %v2760_v48 = vrot.slane %v2759_v62, 1 }
 0x2f7   :  { %v2761_v43 = vadd.f32 %v2760_v48, %v2759_v62 }
 0x2f9   :  { %v2764_v23 = vadd.f32 %v2763_v51, %v2761_v43 }
 0x2fb   :  { %2765 = vst [vmem:[%s5026_s8] sm:$0x1] %v2764_v23 }

</bundles_post_ra>
